<compile_context>
chip_gen: v7x
topology: tpu7x:2x2x1
jax: 0.10.0
libtpu: 0.0.40
codegen_flags: <defaults>
</compile_context>

<pallas_src>
import jax
import jax.numpy as jnp
from jax.experimental import pallas as pl
from jax.experimental.pallas import tpu as pltpu

# ---- norse LIFParameters defaults (LIFCell / lif_feed_forward_step) ----------
DT = 1e-3
TAU_SYN_INV = 1.0 / 5e-3    # 200.0
TAU_MEM_INV = 1.0 / 1e-2    # 100.0
V_LEAK = 0.0
V_TH = 1.0
V_RESET = 0.0

# Folded LIF decay constants (valid because V_LEAK == 0, V_RESET == 0).
DV = DT * TAU_MEM_INV             # 0.1
ALPHA_V = 1.0 - DV                # 0.9
ALPHA_I = 1.0 - DT * TAU_SYN_INV  # 0.8

LAYER_SIZES = [4, 128, 64, 32, 16, 3]   # fc1..fc5
SUBLANE = 8      # f32 sublane tile height -> padded batch size
OUT_PAD = 128    # lane-dense padded fc5 output width


def _lif_layer_over_time(z_all, T, Bp, *, return_sum):
    """Elementwise LIF recurrence of one layer over all T steps.

    z_all: (T*Bp, H) synaptic drive (fc output) for every timestep; timestep t
    occupies the aligned 8-row group [t*Bp, (t+1)*Bp).
    Returns the concatenated spike trains (T*Bp, H), or their sum over time
    (Bp, H) when return_sum=True.
    """
    H = z_all.shape[1]
    v = jnp.zeros((Bp, H), jnp.float32)
    i = jnp.zeros((Bp, H), jnp.float32)
    acc = jnp.zeros((Bp, H), jnp.float32)
    spikes = []
    # Static T -> fully unrolled at trace time (T is small here).
    # TODO(synk): switch to lax.fori_loop(..., unroll=4) writing spikes into a
    # VMEM scratch ref once T grows beyond a few dozen steps.
    for t in range(T):
        z_t = jax.lax.slice_in_dim(z_all, t * Bp, (t + 1) * Bp, axis=0)
        v_dec = ALPHA_V * v + DV * i        # == v + dt*tau_mem_inv*((0 - v) + i)
        spk = v_dec > V_TH                  # strict '>' Heaviside, as in norse
        s = spk.astype(jnp.float32)
        v = jnp.where(spk, V_RESET, v_dec)  # reset-on-spike
        i = ALPHA_I * i + z_t               # i_dec + injected current
        if return_sum:
            acc = acc + s
        else:
            spikes.append(s)
    if return_sum:
        return acc
    return jnp.concatenate(spikes, axis=0)  # aligned 8-row pieces -> cheap


def spiking_kernel(x_ref,
                   w1_ref, b1_ref, w2_ref, b2_ref, w3_ref, b3_ref,
                   w4_ref, b4_ref, w5p_ref, b5p_ref,
                   out_ref):
    TB, _F = x_ref.shape                    # (T*Bp, F)
    Bp = out_ref.shape[0]
    T = TB // Bp

    def fc(act, w_ref, b_ref):
        return (jnp.dot(act, w_ref[...], preferred_element_type=jnp.float32)
                + b_ref[...])

    # Layer-major: one M = T*Bp matmul per fc layer over ALL timesteps; only the
    # elementwise LIF recurrence is serialized over time.
    z1 = fc(x_ref[...], w1_ref, b1_ref)                           # (T*Bp, 128)
    s1 = _lif_layer_over_time(z1, T, Bp, return_sum=False)
    z2 = fc(s1, w2_ref, b2_ref)                                   # (T*Bp, 64)
    s2 = _lif_layer_over_time(z2, T, Bp, return_sum=False)
    z3 = fc(s2, w3_ref, b3_ref)                                   # (T*Bp, 32)
    s3 = _lif_layer_over_time(z3, T, Bp, return_sum=False)
    z4 = fc(s3, w4_ref, b4_ref)                                   # (T*Bp, 16)
    s4_sum = _lif_layer_over_time(z4, T, Bp, return_sum=True)     # (Bp, 16)

    # fc5 hoisted via linearity: sum_t (s4_t @ W5 + b5) = (sum_t s4_t) @ W5 + T*b5.
    # W5/b5 are zero-padded to 128 output lanes, so this store is lane-dense.
    out_ref[...] = (jnp.dot(s4_sum, w5p_ref[...],
                            preferred_element_type=jnp.float32)
                    + float(T) * b5p_ref[...])

    # TODO(synk): the PyTorch forward also dumps per-timestep membrane
    # potentials (scaled by 127) to a CSV via pandas; host-side file I/O has no
    # Pallas equivalent and is skipped.


def init_params(key):
    params = []
    for li in range(5):
        fan_in, fan_out = LAYER_SIZES[li], LAYER_SIZES[li + 1]
        key, kw, kb = jax.random.split(key, 3)
        bound = 1.0 / (fan_in ** 0.5)
        w = jax.random.uniform(kw, (fan_in, fan_out), jnp.float32, -bound, bound)
        b = jax.random.uniform(kb, (1, fan_out), jnp.float32, -bound, bound)
        params += [w, b]
    return params


def spiking_nn_forward(x, params):
    B, T, F = x.shape
    assert F == LAYER_SIZES[0]
    HO = LAYER_SIZES[-1]
    Bp = max(SUBLANE, ((B + SUBLANE - 1) // SUBLANE) * SUBLANE)

    w1, b1, w2, b2, w3, b3, w4, b4, w5, b5 = params
    # Zero-pad fc5 to a lane-dense 128-wide output (sliced back below).
    w5p = jnp.zeros((LAYER_SIZES[4], OUT_PAD), jnp.float32).at[:, :HO].set(w5)
    b5p = jnp.zeros((1, OUT_PAD), jnp.float32).at[:, :HO].set(b5)

    # (B, T, F) -> zero-pad batch to Bp (one sublane tile) -> time-major
    # (T*Bp, F): timestep t occupies the aligned row group [t*Bp, (t+1)*Bp).
    xp = jnp.zeros((Bp, T, F), x.dtype).at[:B].set(x)
    xt = jnp.transpose(xp, (1, 0, 2)).reshape(T * Bp, F)

    ins = (xt, w1, b1, w2, b2, w3, b3, w4, b4, w5p, b5p)

    def full_spec(shape):
        nd = len(shape)
        return pl.BlockSpec(shape, lambda i, _n=nd: (0,) * _n)

    flops = (2 * T * Bp * sum(LAYER_SIZES[k] * LAYER_SIZES[k + 1] for k in range(4))
             + 2 * Bp * LAYER_SIZES[4] * OUT_PAD)
    bytes_accessed = sum(int(a.size) * 4 for a in ins) + Bp * OUT_PAD * 4

    out_padded = pl.pallas_call(
        spiking_kernel,
        out_shape=jax.ShapeDtypeStruct((Bp, OUT_PAD), jnp.float32),
        grid_spec=pl.GridSpec(
            grid=(1,),                              # whole recurrence in one invocation
            in_specs=[full_spec(a.shape) for a in ins],
            out_specs=full_spec((Bp, OUT_PAD))),
        compiler_params=pltpu.CompilerParams(
            dimension_semantics=("arbitrary",)),
        cost_estimate=pl.CostEstimate(
            flops=flops, transcendentals=0, bytes_accessed=bytes_accessed),
    )(*ins)
    return out_padded[:B, :HO]


def reference_forward(x, params):
    """Pure-JAX reference mirroring PyTorch/norse semantics (matmul per step, then sum)."""
    w1, b1, w2, b2, w3, b3, w4, b4, w5, b5 = params
    B, T, F = x.shape

    def lif(inp, state):
        v, i = state
        v_dec = v + DT * TAU_MEM_INV * ((V_LEAK - v) + i)
        i_dec = i - DT * TAU_SYN_INV * i
        z = (v_dec - V_TH > 0.0).astype(jnp.float32)
        return z, ((1.0 - z) * v_dec + z * V_RESET, i_dec + inp)

    def zero_state(h):
        return (jnp.zeros((B, h), jnp.float32), jnp.zeros((B, h), jnp.float32))

    def step(carry, row):
        s1, s2, s3, s4, acc = carry
        z1, s1 = lif(row @ w1 + b1, s1)
        z2, s2 = lif(z1 @ w2 + b2, s2)
        z3, s3 = lif(z2 @ w3 + b3, s3)
        z4, s4 = lif(z3 @ w4 + b4, s4)
        z5 = z4 @ w5 + b5
        return (s1, s2, s3, s4, acc + z5), None

    init = (zero_state(128), zero_state(64), zero_state(32), zero_state(16),
            jnp.zeros((B, 3), jnp.float32))
    carry, _ = jax.lax.scan(step, init, jnp.transpose(x, (1, 0, 2)))
    return carry[-1]


if __name__ == "__main__":
    key = jax.random.PRNGKey(0)
    kp, kx = jax.random.split(key)
    params = init_params(kp)

    B, T, F = 2, 8, 4
    # scale inputs so membrane potentials actually cross threshold sometimes
    x = 5.0 * jax.random.normal(kx, (B, T, F), jnp.float32)

    out = jax.block_until_ready(spiking_nn_forward(x, params))
    ref = jax.block_until_ready(reference_forward(x, params))

    assert out.shape == (B, 3)
    assert jnp.allclose(out, ref, atol=1e-4, rtol=1e-4), (out, ref)

    print("KERNEL_OK")
</pallas_src>

<mosaic_0001>
module attributes {stable_mosaic.version = 11 : i64} {
  func.func @spiking_kernel(%arg0: i32, %arg1: memref<64x4xf32, #tpu.memory_space<vmem>>, %arg2: memref<4x128xf32, #tpu.memory_space<vmem>>, %arg3: memref<1x128xf32, #tpu.memory_space<vmem>>, %arg4: memref<128x64xf32, #tpu.memory_space<vmem>>, %arg5: memref<1x64xf32, #tpu.memory_space<vmem>>, %arg6: memref<64x32xf32, #tpu.memory_space<vmem>>, %arg7: memref<1x32xf32, #tpu.memory_space<vmem>>, %arg8: memref<32x16xf32, #tpu.memory_space<vmem>>, %arg9: memref<1x16xf32, #tpu.memory_space<vmem>>, %arg10: memref<16x128xf32, #tpu.memory_space<vmem>>, %arg11: memref<1x128xf32, #tpu.memory_space<vmem>>, %arg12: memref<8x128xf32, #tpu.memory_space<vmem>>) attributes {dimension_semantics = [#tpu.dimension_semantics<arbitrary>], iteration_bounds = array<i64: 1>, scalar_prefetch = 0 : i64, scratch_operands = 0 : i64, tpu.core_type = #tpu.core_type<tc>, window_params = [{pipeline_mode = #tpu.pipeline_mode<synchronous>, transform_indices = @transform_0, window_bounds = array<i64: 64, 4>}, {pipeline_mode = #tpu.pipeline_mode<synchronous>, transform_indices = @transform_1, window_bounds = array<i64: 4, 128>}, {pipeline_mode = #tpu.pipeline_mode<synchronous>, transform_indices = @transform_2, window_bounds = array<i64: 1, 128>}, {pipeline_mode = #tpu.pipeline_mode<synchronous>, transform_indices = @transform_3, window_bounds = array<i64: 128, 64>}, {pipeline_mode = #tpu.pipeline_mode<synchronous>, transform_indices = @transform_4, window_bounds = array<i64: 1, 64>}, {pipeline_mode = #tpu.pipeline_mode<synchronous>, transform_indices = @transform_5, window_bounds = array<i64: 64, 32>}, {pipeline_mode = #tpu.pipeline_mode<synchronous>, transform_indices = @transform_6, window_bounds = array<i64: 1, 32>}, {pipeline_mode = #tpu.pipeline_mode<synchronous>, transform_indices = @transform_7, window_bounds = array<i64: 32, 16>}, {pipeline_mode = #tpu.pipeline_mode<synchronous>, transform_indices = @transform_8, window_bounds = array<i64: 1, 16>}, {pipeline_mode = #tpu.pipeline_mode<synchronous>, transform_indices = @transform_9, window_bounds = array<i64: 16, 128>}, {pipeline_mode = #tpu.pipeline_mode<synchronous>, transform_indices = @transform_10, window_bounds = array<i64: 1, 128>}, {pipeline_mode = #tpu.pipeline_mode<synchronous>, transform_indices = @transform_11, window_bounds = array<i64: 8, 128>}]} {
    %c0 = arith.constant 0 : index
    %c0_0 = arith.constant 0 : index
    %0 = vector.load %arg1[%c0, %c0_0] : memref<64x4xf32, #tpu.memory_space<vmem>>, vector<64x4xf32>
    %c0_1 = arith.constant 0 : index
    %c0_2 = arith.constant 0 : index
    %1 = vector.load %arg2[%c0_1, %c0_2] : memref<4x128xf32, #tpu.memory_space<vmem>>, vector<4x128xf32>
    %cst = arith.constant dense<0.000000e+00> : vector<64x128xf32>
    %2 = tpu.matmul %0, %1, %cst {dimension_numbers = #tpu.dot_dimension_numbers<[1], [0], [0], [1], [0, 0, 1, 1], [], []>} : vector<64x4xf32>, vector<4x128xf32>, vector<64x128xf32> -> vector<64x128xf32>
    %c0_3 = arith.constant 0 : index
    %c0_4 = arith.constant 0 : index
    %3 = vector.load %arg3[%c0_3, %c0_4] : memref<1x128xf32, #tpu.memory_space<vmem>>, vector<1x128xf32>
    %4 = vector.broadcast %3 : vector<1x128xf32> to vector<64x128xf32>
    %5 = arith.addf %2, %4 : vector<64x128xf32>
    %cst_5 = arith.constant 0.000000e+00 : f32
    %6 = vector.broadcast %cst_5 : f32 to vector<8x128xf32>
    %cst_6 = arith.constant 0.000000e+00 : f32
    %7 = vector.broadcast %cst_6 : f32 to vector<8x128xf32>
    %8 = vector.extract_strided_slice %5 {offsets = [0, 0], sizes = [8, 128], strides = [1, 1]} : vector<64x128xf32> to vector<8x128xf32>
    %cst_7 = arith.constant 0.899999976 : f32
    %9 = vector.broadcast %cst_7 : f32 to vector<8x128xf32>
    %10 = arith.mulf %9, %6 : vector<8x128xf32>
    %cst_8 = arith.constant 1.000000e-01 : f32
    %11 = vector.broadcast %cst_8 : f32 to vector<8x128xf32>
    %12 = arith.mulf %11, %7 : vector<8x128xf32>
    %13 = arith.addf %10, %12 : vector<8x128xf32>
    %cst_9 = arith.constant 1.000000e+00 : f32
    %14 = vector.broadcast %cst_9 : f32 to vector<8x128xf32>
    %15 = arith.cmpf ogt, %13, %14 : vector<8x128xf32>
    %16 = arith.extui %15 : vector<8x128xi1> to vector<8x128xi32>
    %17 = arith.sitofp %16 : vector<8x128xi32> to vector<8x128xf32>
    %cst_10 = arith.constant 0.000000e+00 : f32
    %18 = vector.broadcast %cst_10 : f32 to vector<8x128xf32>
    %19 = arith.select %15, %18, %13 : vector<8x128xi1>, vector<8x128xf32>
    %cst_11 = arith.constant 8.000000e-01 : f32
    %20 = vector.broadcast %cst_11 : f32 to vector<8x128xf32>
    %21 = arith.mulf %20, %7 : vector<8x128xf32>
    %22 = arith.addf %21, %8 : vector<8x128xf32>
    %23 = vector.extract_strided_slice %5 {offsets = [8, 0], sizes = [8, 128], strides = [1, 1]} : vector<64x128xf32> to vector<8x128xf32>
    %cst_12 = arith.constant 0.899999976 : f32
    %24 = vector.broadcast %cst_12 : f32 to vector<8x128xf32>
    %25 = arith.mulf %24, %19 : vector<8x128xf32>
    %cst_13 = arith.constant 1.000000e-01 : f32
    %26 = vector.broadcast %cst_13 : f32 to vector<8x128xf32>
    %27 = arith.mulf %26, %22 : vector<8x128xf32>
    %28 = arith.addf %25, %27 : vector<8x128xf32>
    %cst_14 = arith.constant 1.000000e+00 : f32
    %29 = vector.broadcast %cst_14 : f32 to vector<8x128xf32>
    %30 = arith.cmpf ogt, %28, %29 : vector<8x128xf32>
    %31 = arith.extui %30 : vector<8x128xi1> to vector<8x128xi32>
    %32 = arith.sitofp %31 : vector<8x128xi32> to vector<8x128xf32>
    %cst_15 = arith.constant 0.000000e+00 : f32
    %33 = vector.broadcast %cst_15 : f32 to vector<8x128xf32>
    %34 = arith.select %30, %33, %28 : vector<8x128xi1>, vector<8x128xf32>
    %cst_16 = arith.constant 8.000000e-01 : f32
    %35 = vector.broadcast %cst_16 : f32 to vector<8x128xf32>
    %36 = arith.mulf %35, %22 : vector<8x128xf32>
    %37 = arith.addf %36, %23 : vector<8x128xf32>
    %38 = vector.extract_strided_slice %5 {offsets = [16, 0], sizes = [8, 128], strides = [1, 1]} : vector<64x128xf32> to vector<8x128xf32>
    %cst_17 = arith.constant 0.899999976 : f32
    %39 = vector.broadcast %cst_17 : f32 to vector<8x128xf32>
    %40 = arith.mulf %39, %34 : vector<8x128xf32>
    %cst_18 = arith.constant 1.000000e-01 : f32
    %41 = vector.broadcast %cst_18 : f32 to vector<8x128xf32>
    %42 = arith.mulf %41, %37 : vector<8x128xf32>
    %43 = arith.addf %40, %42 : vector<8x128xf32>
    %cst_19 = arith.constant 1.000000e+00 : f32
    %44 = vector.broadcast %cst_19 : f32 to vector<8x128xf32>
    %45 = arith.cmpf ogt, %43, %44 : vector<8x128xf32>
    %46 = arith.extui %45 : vector<8x128xi1> to vector<8x128xi32>
    %47 = arith.sitofp %46 : vector<8x128xi32> to vector<8x128xf32>
    %cst_20 = arith.constant 0.000000e+00 : f32
    %48 = vector.broadcast %cst_20 : f32 to vector<8x128xf32>
    %49 = arith.select %45, %48, %43 : vector<8x128xi1>, vector<8x128xf32>
    %cst_21 = arith.constant 8.000000e-01 : f32
    %50 = vector.broadcast %cst_21 : f32 to vector<8x128xf32>
    %51 = arith.mulf %50, %37 : vector<8x128xf32>
    %52 = arith.addf %51, %38 : vector<8x128xf32>
    %53 = vector.extract_strided_slice %5 {offsets = [24, 0], sizes = [8, 128], strides = [1, 1]} : vector<64x128xf32> to vector<8x128xf32>
    %cst_22 = arith.constant 0.899999976 : f32
    %54 = vector.broadcast %cst_22 : f32 to vector<8x128xf32>
    %55 = arith.mulf %54, %49 : vector<8x128xf32>
    %cst_23 = arith.constant 1.000000e-01 : f32
    %56 = vector.broadcast %cst_23 : f32 to vector<8x128xf32>
    %57 = arith.mulf %56, %52 : vector<8x128xf32>
    %58 = arith.addf %55, %57 : vector<8x128xf32>
    %cst_24 = arith.constant 1.000000e+00 : f32
    %59 = vector.broadcast %cst_24 : f32 to vector<8x128xf32>
    %60 = arith.cmpf ogt, %58, %59 : vector<8x128xf32>
    %61 = arith.extui %60 : vector<8x128xi1> to vector<8x128xi32>
    %62 = arith.sitofp %61 : vector<8x128xi32> to vector<8x128xf32>
    %cst_25 = arith.constant 0.000000e+00 : f32
    %63 = vector.broadcast %cst_25 : f32 to vector<8x128xf32>
    %64 = arith.select %60, %63, %58 : vector<8x128xi1>, vector<8x128xf32>
    %cst_26 = arith.constant 8.000000e-01 : f32
    %65 = vector.broadcast %cst_26 : f32 to vector<8x128xf32>
    %66 = arith.mulf %65, %52 : vector<8x128xf32>
    %67 = arith.addf %66, %53 : vector<8x128xf32>
    %68 = vector.extract_strided_slice %5 {offsets = [32, 0], sizes = [8, 128], strides = [1, 1]} : vector<64x128xf32> to vector<8x128xf32>
    %cst_27 = arith.constant 0.899999976 : f32
    %69 = vector.broadcast %cst_27 : f32 to vector<8x128xf32>
    %70 = arith.mulf %69, %64 : vector<8x128xf32>
    %cst_28 = arith.constant 1.000000e-01 : f32
    %71 = vector.broadcast %cst_28 : f32 to vector<8x128xf32>
    %72 = arith.mulf %71, %67 : vector<8x128xf32>
    %73 = arith.addf %70, %72 : vector<8x128xf32>
    %cst_29 = arith.constant 1.000000e+00 : f32
    %74 = vector.broadcast %cst_29 : f32 to vector<8x128xf32>
    %75 = arith.cmpf ogt, %73, %74 : vector<8x128xf32>
    %76 = arith.extui %75 : vector<8x128xi1> to vector<8x128xi32>
    %77 = arith.sitofp %76 : vector<8x128xi32> to vector<8x128xf32>
    %cst_30 = arith.constant 0.000000e+00 : f32
    %78 = vector.broadcast %cst_30 : f32 to vector<8x128xf32>
    %79 = arith.select %75, %78, %73 : vector<8x128xi1>, vector<8x128xf32>
    %cst_31 = arith.constant 8.000000e-01 : f32
    %80 = vector.broadcast %cst_31 : f32 to vector<8x128xf32>
    %81 = arith.mulf %80, %67 : vector<8x128xf32>
    %82 = arith.addf %81, %68 : vector<8x128xf32>
    %83 = vector.extract_strided_slice %5 {offsets = [40, 0], sizes = [8, 128], strides = [1, 1]} : vector<64x128xf32> to vector<8x128xf32>
    %cst_32 = arith.constant 0.899999976 : f32
    %84 = vector.broadcast %cst_32 : f32 to vector<8x128xf32>
    %85 = arith.mulf %84, %79 : vector<8x128xf32>
    %cst_33 = arith.constant 1.000000e-01 : f32
    %86 = vector.broadcast %cst_33 : f32 to vector<8x128xf32>
    %87 = arith.mulf %86, %82 : vector<8x128xf32>
    %88 = arith.addf %85, %87 : vector<8x128xf32>
    %cst_34 = arith.constant 1.000000e+00 : f32
    %89 = vector.broadcast %cst_34 : f32 to vector<8x128xf32>
    %90 = arith.cmpf ogt, %88, %89 : vector<8x128xf32>
    %91 = arith.extui %90 : vector<8x128xi1> to vector<8x128xi32>
    %92 = arith.sitofp %91 : vector<8x128xi32> to vector<8x128xf32>
    %cst_35 = arith.constant 0.000000e+00 : f32
    %93 = vector.broadcast %cst_35 : f32 to vector<8x128xf32>
    %94 = arith.select %90, %93, %88 : vector<8x128xi1>, vector<8x128xf32>
    %cst_36 = arith.constant 8.000000e-01 : f32
    %95 = vector.broadcast %cst_36 : f32 to vector<8x128xf32>
    %96 = arith.mulf %95, %82 : vector<8x128xf32>
    %97 = arith.addf %96, %83 : vector<8x128xf32>
    %98 = vector.extract_strided_slice %5 {offsets = [48, 0], sizes = [8, 128], strides = [1, 1]} : vector<64x128xf32> to vector<8x128xf32>
    %cst_37 = arith.constant 0.899999976 : f32
    %99 = vector.broadcast %cst_37 : f32 to vector<8x128xf32>
    %100 = arith.mulf %99, %94 : vector<8x128xf32>
    %cst_38 = arith.constant 1.000000e-01 : f32
    %101 = vector.broadcast %cst_38 : f32 to vector<8x128xf32>
    %102 = arith.mulf %101, %97 : vector<8x128xf32>
    %103 = arith.addf %100, %102 : vector<8x128xf32>
    %cst_39 = arith.constant 1.000000e+00 : f32
    %104 = vector.broadcast %cst_39 : f32 to vector<8x128xf32>
    %105 = arith.cmpf ogt, %103, %104 : vector<8x128xf32>
    %106 = arith.extui %105 : vector<8x128xi1> to vector<8x128xi32>
    %107 = arith.sitofp %106 : vector<8x128xi32> to vector<8x128xf32>
    %cst_40 = arith.constant 0.000000e+00 : f32
    %108 = vector.broadcast %cst_40 : f32 to vector<8x128xf32>
    %109 = arith.select %105, %108, %103 : vector<8x128xi1>, vector<8x128xf32>
    %cst_41 = arith.constant 8.000000e-01 : f32
    %110 = vector.broadcast %cst_41 : f32 to vector<8x128xf32>
    %111 = arith.mulf %110, %97 : vector<8x128xf32>
    %112 = arith.addf %111, %98 : vector<8x128xf32>
    %cst_42 = arith.constant 0.899999976 : f32
    %113 = vector.broadcast %cst_42 : f32 to vector<8x128xf32>
    %114 = arith.mulf %113, %109 : vector<8x128xf32>
    %cst_43 = arith.constant 1.000000e-01 : f32
    %115 = vector.broadcast %cst_43 : f32 to vector<8x128xf32>
    %116 = arith.mulf %115, %112 : vector<8x128xf32>
    %117 = arith.addf %114, %116 : vector<8x128xf32>
    %cst_44 = arith.constant 1.000000e+00 : f32
    %118 = vector.broadcast %cst_44 : f32 to vector<8x128xf32>
    %119 = arith.cmpf ogt, %117, %118 : vector<8x128xf32>
    %120 = arith.extui %119 : vector<8x128xi1> to vector<8x128xi32>
    %121 = arith.sitofp %120 : vector<8x128xi32> to vector<8x128xf32>
    %122 = tpu.concatenate %17, %32, %47, %62, %77, %92, %107, %121 in 0 : vector<8x128xf32>, vector<8x128xf32>, vector<8x128xf32>, vector<8x128xf32>, vector<8x128xf32>, vector<8x128xf32>, vector<8x128xf32>, vector<8x128xf32> -> vector<64x128xf32>
    %c0_45 = arith.constant 0 : index
    %c0_46 = arith.constant 0 : index
    %123 = vector.load %arg4[%c0_45, %c0_46] : memref<128x64xf32, #tpu.memory_space<vmem>>, vector<128x64xf32>
    %cst_47 = arith.constant dense<0.000000e+00> : vector<64x64xf32>
    %124 = tpu.matmul %122, %123, %cst_47 {dimension_numbers = #tpu.dot_dimension_numbers<[1], [0], [0], [1], [0, 0, 1, 1], [], []>} : vector<64x128xf32>, vector<128x64xf32>, vector<64x64xf32> -> vector<64x64xf32>
    %c0_48 = arith.constant 0 : index
    %c0_49 = arith.constant 0 : index
    %125 = vector.load %arg5[%c0_48, %c0_49] : memref<1x64xf32, #tpu.memory_space<vmem>>, vector<1x64xf32>
    %126 = vector.broadcast %125 : vector<1x64xf32> to vector<64x64xf32>
    %127 = arith.addf %124, %126 : vector<64x64xf32>
    %cst_50 = arith.constant 0.000000e+00 : f32
    %128 = vector.broadcast %cst_50 : f32 to vector<8x64xf32>
    %cst_51 = arith.constant 0.000000e+00 : f32
    %129 = vector.broadcast %cst_51 : f32 to vector<8x64xf32>
    %130 = vector.extract_strided_slice %127 {offsets = [0, 0], sizes = [8, 64], strides = [1, 1]} : vector<64x64xf32> to vector<8x64xf32>
    %cst_52 = arith.constant 0.899999976 : f32
    %131 = vector.broadcast %cst_52 : f32 to vector<8x64xf32>
    %132 = arith.mulf %131, %128 : vector<8x64xf32>
    %cst_53 = arith.constant 1.000000e-01 : f32
    %133 = vector.broadcast %cst_53 : f32 to vector<8x64xf32>
    %134 = arith.mulf %133, %129 : vector<8x64xf32>
    %135 = arith.addf %132, %134 : vector<8x64xf32>
    %cst_54 = arith.constant 1.000000e+00 : f32
    %136 = vector.broadcast %cst_54 : f32 to vector<8x64xf32>
    %137 = arith.cmpf ogt, %135, %136 : vector<8x64xf32>
    %138 = arith.extui %137 : vector<8x64xi1> to vector<8x64xi32>
    %139 = arith.sitofp %138 : vector<8x64xi32> to vector<8x64xf32>
    %cst_55 = arith.constant 0.000000e+00 : f32
    %140 = vector.broadcast %cst_55 : f32 to vector<8x64xf32>
    %141 = arith.select %137, %140, %135 : vector<8x64xi1>, vector<8x64xf32>
    %cst_56 = arith.constant 8.000000e-01 : f32
    %142 = vector.broadcast %cst_56 : f32 to vector<8x64xf32>
    %143 = arith.mulf %142, %129 : vector<8x64xf32>
    %144 = arith.addf %143, %130 : vector<8x64xf32>
    %145 = vector.extract_strided_slice %127 {offsets = [8, 0], sizes = [8, 64], strides = [1, 1]} : vector<64x64xf32> to vector<8x64xf32>
    %cst_57 = arith.constant 0.899999976 : f32
    %146 = vector.broadcast %cst_57 : f32 to vector<8x64xf32>
    %147 = arith.mulf %146, %141 : vector<8x64xf32>
    %cst_58 = arith.constant 1.000000e-01 : f32
    %148 = vector.broadcast %cst_58 : f32 to vector<8x64xf32>
    %149 = arith.mulf %148, %144 : vector<8x64xf32>
    %150 = arith.addf %147, %149 : vector<8x64xf32>
    %cst_59 = arith.constant 1.000000e+00 : f32
    %151 = vector.broadcast %cst_59 : f32 to vector<8x64xf32>
    %152 = arith.cmpf ogt, %150, %151 : vector<8x64xf32>
    %153 = arith.extui %152 : vector<8x64xi1> to vector<8x64xi32>
    %154 = arith.sitofp %153 : vector<8x64xi32> to vector<8x64xf32>
    %cst_60 = arith.constant 0.000000e+00 : f32
    %155 = vector.broadcast %cst_60 : f32 to vector<8x64xf32>
    %156 = arith.select %152, %155, %150 : vector<8x64xi1>, vector<8x64xf32>
    %cst_61 = arith.constant 8.000000e-01 : f32
    %157 = vector.broadcast %cst_61 : f32 to vector<8x64xf32>
    %158 = arith.mulf %157, %144 : vector<8x64xf32>
    %159 = arith.addf %158, %145 : vector<8x64xf32>
    %160 = vector.extract_strided_slice %127 {offsets = [16, 0], sizes = [8, 64], strides = [1, 1]} : vector<64x64xf32> to vector<8x64xf32>
    %cst_62 = arith.constant 0.899999976 : f32
    %161 = vector.broadcast %cst_62 : f32 to vector<8x64xf32>
    %162 = arith.mulf %161, %156 : vector<8x64xf32>
    %cst_63 = arith.constant 1.000000e-01 : f32
    %163 = vector.broadcast %cst_63 : f32 to vector<8x64xf32>
    %164 = arith.mulf %163, %159 : vector<8x64xf32>
    %165 = arith.addf %162, %164 : vector<8x64xf32>
    %cst_64 = arith.constant 1.000000e+00 : f32
    %166 = vector.broadcast %cst_64 : f32 to vector<8x64xf32>
    %167 = arith.cmpf ogt, %165, %166 : vector<8x64xf32>
    %168 = arith.extui %167 : vector<8x64xi1> to vector<8x64xi32>
    %169 = arith.sitofp %168 : vector<8x64xi32> to vector<8x64xf32>
    %cst_65 = arith.constant 0.000000e+00 : f32
    %170 = vector.broadcast %cst_65 : f32 to vector<8x64xf32>
    %171 = arith.select %167, %170, %165 : vector<8x64xi1>, vector<8x64xf32>
    %cst_66 = arith.constant 8.000000e-01 : f32
    %172 = vector.broadcast %cst_66 : f32 to vector<8x64xf32>
    %173 = arith.mulf %172, %159 : vector<8x64xf32>
    %174 = arith.addf %173, %160 : vector<8x64xf32>
    %175 = vector.extract_strided_slice %127 {offsets = [24, 0], sizes = [8, 64], strides = [1, 1]} : vector<64x64xf32> to vector<8x64xf32>
    %cst_67 = arith.constant 0.899999976 : f32
    %176 = vector.broadcast %cst_67 : f32 to vector<8x64xf32>
    %177 = arith.mulf %176, %171 : vector<8x64xf32>
    %cst_68 = arith.constant 1.000000e-01 : f32
    %178 = vector.broadcast %cst_68 : f32 to vector<8x64xf32>
    %179 = arith.mulf %178, %174 : vector<8x64xf32>
    %180 = arith.addf %177, %179 : vector<8x64xf32>
    %cst_69 = arith.constant 1.000000e+00 : f32
    %181 = vector.broadcast %cst_69 : f32 to vector<8x64xf32>
    %182 = arith.cmpf ogt, %180, %181 : vector<8x64xf32>
    %183 = arith.extui %182 : vector<8x64xi1> to vector<8x64xi32>
    %184 = arith.sitofp %183 : vector<8x64xi32> to vector<8x64xf32>
    %cst_70 = arith.constant 0.000000e+00 : f32
    %185 = vector.broadcast %cst_70 : f32 to vector<8x64xf32>
    %186 = arith.select %182, %185, %180 : vector<8x64xi1>, vector<8x64xf32>
    %cst_71 = arith.constant 8.000000e-01 : f32
    %187 = vector.broadcast %cst_71 : f32 to vector<8x64xf32>
    %188 = arith.mulf %187, %174 : vector<8x64xf32>
    %189 = arith.addf %188, %175 : vector<8x64xf32>
    %190 = vector.extract_strided_slice %127 {offsets = [32, 0], sizes = [8, 64], strides = [1, 1]} : vector<64x64xf32> to vector<8x64xf32>
    %cst_72 = arith.constant 0.899999976 : f32
    %191 = vector.broadcast %cst_72 : f32 to vector<8x64xf32>
    %192 = arith.mulf %191, %186 : vector<8x64xf32>
    %cst_73 = arith.constant 1.000000e-01 : f32
    %193 = vector.broadcast %cst_73 : f32 to vector<8x64xf32>
    %194 = arith.mulf %193, %189 : vector<8x64xf32>
    %195 = arith.addf %192, %194 : vector<8x64xf32>
    %cst_74 = arith.constant 1.000000e+00 : f32
    %196 = vector.broadcast %cst_74 : f32 to vector<8x64xf32>
    %197 = arith.cmpf ogt, %195, %196 : vector<8x64xf32>
    %198 = arith.extui %197 : vector<8x64xi1> to vector<8x64xi32>
    %199 = arith.sitofp %198 : vector<8x64xi32> to vector<8x64xf32>
    %cst_75 = arith.constant 0.000000e+00 : f32
    %200 = vector.broadcast %cst_75 : f32 to vector<8x64xf32>
    %201 = arith.select %197, %200, %195 : vector<8x64xi1>, vector<8x64xf32>
    %cst_76 = arith.constant 8.000000e-01 : f32
    %202 = vector.broadcast %cst_76 : f32 to vector<8x64xf32>
    %203 = arith.mulf %202, %189 : vector<8x64xf32>
    %204 = arith.addf %203, %190 : vector<8x64xf32>
    %205 = vector.extract_strided_slice %127 {offsets = [40, 0], sizes = [8, 64], strides = [1, 1]} : vector<64x64xf32> to vector<8x64xf32>
    %cst_77 = arith.constant 0.899999976 : f32
    %206 = vector.broadcast %cst_77 : f32 to vector<8x64xf32>
    %207 = arith.mulf %206, %201 : vector<8x64xf32>
    %cst_78 = arith.constant 1.000000e-01 : f32
    %208 = vector.broadcast %cst_78 : f32 to vector<8x64xf32>
    %209 = arith.mulf %208, %204 : vector<8x64xf32>
    %210 = arith.addf %207, %209 : vector<8x64xf32>
    %cst_79 = arith.constant 1.000000e+00 : f32
    %211 = vector.broadcast %cst_79 : f32 to vector<8x64xf32>
    %212 = arith.cmpf ogt, %210, %211 : vector<8x64xf32>
    %213 = arith.extui %212 : vector<8x64xi1> to vector<8x64xi32>
    %214 = arith.sitofp %213 : vector<8x64xi32> to vector<8x64xf32>
    %cst_80 = arith.constant 0.000000e+00 : f32
    %215 = vector.broadcast %cst_80 : f32 to vector<8x64xf32>
    %216 = arith.select %212, %215, %210 : vector<8x64xi1>, vector<8x64xf32>
    %cst_81 = arith.constant 8.000000e-01 : f32
    %217 = vector.broadcast %cst_81 : f32 to vector<8x64xf32>
    %218 = arith.mulf %217, %204 : vector<8x64xf32>
    %219 = arith.addf %218, %205 : vector<8x64xf32>
    %220 = vector.extract_strided_slice %127 {offsets = [48, 0], sizes = [8, 64], strides = [1, 1]} : vector<64x64xf32> to vector<8x64xf32>
    %cst_82 = arith.constant 0.899999976 : f32
    %221 = vector.broadcast %cst_82 : f32 to vector<8x64xf32>
    %222 = arith.mulf %221, %216 : vector<8x64xf32>
    %cst_83 = arith.constant 1.000000e-01 : f32
    %223 = vector.broadcast %cst_83 : f32 to vector<8x64xf32>
    %224 = arith.mulf %223, %219 : vector<8x64xf32>
    %225 = arith.addf %222, %224 : vector<8x64xf32>
    %cst_84 = arith.constant 1.000000e+00 : f32
    %226 = vector.broadcast %cst_84 : f32 to vector<8x64xf32>
    %227 = arith.cmpf ogt, %225, %226 : vector<8x64xf32>
    %228 = arith.extui %227 : vector<8x64xi1> to vector<8x64xi32>
    %229 = arith.sitofp %228 : vector<8x64xi32> to vector<8x64xf32>
    %cst_85 = arith.constant 0.000000e+00 : f32
    %230 = vector.broadcast %cst_85 : f32 to vector<8x64xf32>
    %231 = arith.select %227, %230, %225 : vector<8x64xi1>, vector<8x64xf32>
    %cst_86 = arith.constant 8.000000e-01 : f32
    %232 = vector.broadcast %cst_86 : f32 to vector<8x64xf32>
    %233 = arith.mulf %232, %219 : vector<8x64xf32>
    %234 = arith.addf %233, %220 : vector<8x64xf32>
    %cst_87 = arith.constant 0.899999976 : f32
    %235 = vector.broadcast %cst_87 : f32 to vector<8x64xf32>
    %236 = arith.mulf %235, %231 : vector<8x64xf32>
    %cst_88 = arith.constant 1.000000e-01 : f32
    %237 = vector.broadcast %cst_88 : f32 to vector<8x64xf32>
    %238 = arith.mulf %237, %234 : vector<8x64xf32>
    %239 = arith.addf %236, %238 : vector<8x64xf32>
    %cst_89 = arith.constant 1.000000e+00 : f32
    %240 = vector.broadcast %cst_89 : f32 to vector<8x64xf32>
    %241 = arith.cmpf ogt, %239, %240 : vector<8x64xf32>
    %242 = arith.extui %241 : vector<8x64xi1> to vector<8x64xi32>
    %243 = arith.sitofp %242 : vector<8x64xi32> to vector<8x64xf32>
    %244 = tpu.concatenate %139, %154, %169, %184, %199, %214, %229, %243 in 0 : vector<8x64xf32>, vector<8x64xf32>, vector<8x64xf32>, vector<8x64xf32>, vector<8x64xf32>, vector<8x64xf32>, vector<8x64xf32>, vector<8x64xf32> -> vector<64x64xf32>
    %c0_90 = arith.constant 0 : index
    %c0_91 = arith.constant 0 : index
    %245 = vector.load %arg6[%c0_90, %c0_91] : memref<64x32xf32, #tpu.memory_space<vmem>>, vector<64x32xf32>
    %cst_92 = arith.constant dense<0.000000e+00> : vector<64x32xf32>
    %246 = tpu.matmul %244, %245, %cst_92 {dimension_numbers = #tpu.dot_dimension_numbers<[1], [0], [0], [1], [0, 0, 1, 1], [], []>} : vector<64x64xf32>, vector<64x32xf32>, vector<64x32xf32> -> vector<64x32xf32>
    %c0_93 = arith.constant 0 : index
    %c0_94 = arith.constant 0 : index
    %247 = vector.load %arg7[%c0_93, %c0_94] : memref<1x32xf32, #tpu.memory_space<vmem>>, vector<1x32xf32>
    %248 = vector.broadcast %247 : vector<1x32xf32> to vector<64x32xf32>
    %249 = arith.addf %246, %248 : vector<64x32xf32>
    %cst_95 = arith.constant 0.000000e+00 : f32
    %250 = vector.broadcast %cst_95 : f32 to vector<8x32xf32>
    %cst_96 = arith.constant 0.000000e+00 : f32
    %251 = vector.broadcast %cst_96 : f32 to vector<8x32xf32>
    %252 = vector.extract_strided_slice %249 {offsets = [0, 0], sizes = [8, 32], strides = [1, 1]} : vector<64x32xf32> to vector<8x32xf32>
    %cst_97 = arith.constant 0.899999976 : f32
    %253 = vector.broadcast %cst_97 : f32 to vector<8x32xf32>
    %254 = arith.mulf %253, %250 : vector<8x32xf32>
    %cst_98 = arith.constant 1.000000e-01 : f32
    %255 = vector.broadcast %cst_98 : f32 to vector<8x32xf32>
    %256 = arith.mulf %255, %251 : vector<8x32xf32>
    %257 = arith.addf %254, %256 : vector<8x32xf32>
    %cst_99 = arith.constant 1.000000e+00 : f32
    %258 = vector.broadcast %cst_99 : f32 to vector<8x32xf32>
    %259 = arith.cmpf ogt, %257, %258 : vector<8x32xf32>
    %260 = arith.extui %259 : vector<8x32xi1> to vector<8x32xi32>
    %261 = arith.sitofp %260 : vector<8x32xi32> to vector<8x32xf32>
    %cst_100 = arith.constant 0.000000e+00 : f32
    %262 = vector.broadcast %cst_100 : f32 to vector<8x32xf32>
    %263 = arith.select %259, %262, %257 : vector<8x32xi1>, vector<8x32xf32>
    %cst_101 = arith.constant 8.000000e-01 : f32
    %264 = vector.broadcast %cst_101 : f32 to vector<8x32xf32>
    %265 = arith.mulf %264, %251 : vector<8x32xf32>
    %266 = arith.addf %265, %252 : vector<8x32xf32>
    %267 = vector.extract_strided_slice %249 {offsets = [8, 0], sizes = [8, 32], strides = [1, 1]} : vector<64x32xf32> to vector<8x32xf32>
    %cst_102 = arith.constant 0.899999976 : f32
    %268 = vector.broadcast %cst_102 : f32 to vector<8x32xf32>
    %269 = arith.mulf %268, %263 : vector<8x32xf32>
    %cst_103 = arith.constant 1.000000e-01 : f32
    %270 = vector.broadcast %cst_103 : f32 to vector<8x32xf32>
    %271 = arith.mulf %270, %266 : vector<8x32xf32>
    %272 = arith.addf %269, %271 : vector<8x32xf32>
    %cst_104 = arith.constant 1.000000e+00 : f32
    %273 = vector.broadcast %cst_104 : f32 to vector<8x32xf32>
    %274 = arith.cmpf ogt, %272, %273 : vector<8x32xf32>
    %275 = arith.extui %274 : vector<8x32xi1> to vector<8x32xi32>
    %276 = arith.sitofp %275 : vector<8x32xi32> to vector<8x32xf32>
    %cst_105 = arith.constant 0.000000e+00 : f32
    %277 = vector.broadcast %cst_105 : f32 to vector<8x32xf32>
    %278 = arith.select %274, %277, %272 : vector<8x32xi1>, vector<8x32xf32>
    %cst_106 = arith.constant 8.000000e-01 : f32
    %279 = vector.broadcast %cst_106 : f32 to vector<8x32xf32>
    %280 = arith.mulf %279, %266 : vector<8x32xf32>
    %281 = arith.addf %280, %267 : vector<8x32xf32>
    %282 = vector.extract_strided_slice %249 {offsets = [16, 0], sizes = [8, 32], strides = [1, 1]} : vector<64x32xf32> to vector<8x32xf32>
    %cst_107 = arith.constant 0.899999976 : f32
    %283 = vector.broadcast %cst_107 : f32 to vector<8x32xf32>
    %284 = arith.mulf %283, %278 : vector<8x32xf32>
    %cst_108 = arith.constant 1.000000e-01 : f32
    %285 = vector.broadcast %cst_108 : f32 to vector<8x32xf32>
    %286 = arith.mulf %285, %281 : vector<8x32xf32>
    %287 = arith.addf %284, %286 : vector<8x32xf32>
    %cst_109 = arith.constant 1.000000e+00 : f32
    %288 = vector.broadcast %cst_109 : f32 to vector<8x32xf32>
    %289 = arith.cmpf ogt, %287, %288 : vector<8x32xf32>
    %290 = arith.extui %289 : vector<8x32xi1> to vector<8x32xi32>
    %291 = arith.sitofp %290 : vector<8x32xi32> to vector<8x32xf32>
    %cst_110 = arith.constant 0.000000e+00 : f32
    %292 = vector.broadcast %cst_110 : f32 to vector<8x32xf32>
    %293 = arith.select %289, %292, %287 : vector<8x32xi1>, vector<8x32xf32>
    %cst_111 = arith.constant 8.000000e-01 : f32
    %294 = vector.broadcast %cst_111 : f32 to vector<8x32xf32>
    %295 = arith.mulf %294, %281 : vector<8x32xf32>
    %296 = arith.addf %295, %282 : vector<8x32xf32>
    %297 = vector.extract_strided_slice %249 {offsets = [24, 0], sizes = [8, 32], strides = [1, 1]} : vector<64x32xf32> to vector<8x32xf32>
    %cst_112 = arith.constant 0.899999976 : f32
    %298 = vector.broadcast %cst_112 : f32 to vector<8x32xf32>
    %299 = arith.mulf %298, %293 : vector<8x32xf32>
    %cst_113 = arith.constant 1.000000e-01 : f32
    %300 = vector.broadcast %cst_113 : f32 to vector<8x32xf32>
    %301 = arith.mulf %300, %296 : vector<8x32xf32>
    %302 = arith.addf %299, %301 : vector<8x32xf32>
    %cst_114 = arith.constant 1.000000e+00 : f32
    %303 = vector.broadcast %cst_114 : f32 to vector<8x32xf32>
    %304 = arith.cmpf ogt, %302, %303 : vector<8x32xf32>
    %305 = arith.extui %304 : vector<8x32xi1> to vector<8x32xi32>
    %306 = arith.sitofp %305 : vector<8x32xi32> to vector<8x32xf32>
    %cst_115 = arith.constant 0.000000e+00 : f32
    %307 = vector.broadcast %cst_115 : f32 to vector<8x32xf32>
    %308 = arith.select %304, %307, %302 : vector<8x32xi1>, vector<8x32xf32>
    %cst_116 = arith.constant 8.000000e-01 : f32
    %309 = vector.broadcast %cst_116 : f32 to vector<8x32xf32>
    %310 = arith.mulf %309, %296 : vector<8x32xf32>
    %311 = arith.addf %310, %297 : vector<8x32xf32>
    %312 = vector.extract_strided_slice %249 {offsets = [32, 0], sizes = [8, 32], strides = [1, 1]} : vector<64x32xf32> to vector<8x32xf32>
    %cst_117 = arith.constant 0.899999976 : f32
    %313 = vector.broadcast %cst_117 : f32 to vector<8x32xf32>
    %314 = arith.mulf %313, %308 : vector<8x32xf32>
    %cst_118 = arith.constant 1.000000e-01 : f32
    %315 = vector.broadcast %cst_118 : f32 to vector<8x32xf32>
    %316 = arith.mulf %315, %311 : vector<8x32xf32>
    %317 = arith.addf %314, %316 : vector<8x32xf32>
    %cst_119 = arith.constant 1.000000e+00 : f32
    %318 = vector.broadcast %cst_119 : f32 to vector<8x32xf32>
    %319 = arith.cmpf ogt, %317, %318 : vector<8x32xf32>
    %320 = arith.extui %319 : vector<8x32xi1> to vector<8x32xi32>
    %321 = arith.sitofp %320 : vector<8x32xi32> to vector<8x32xf32>
    %cst_120 = arith.constant 0.000000e+00 : f32
    %322 = vector.broadcast %cst_120 : f32 to vector<8x32xf32>
    %323 = arith.select %319, %322, %317 : vector<8x32xi1>, vector<8x32xf32>
    %cst_121 = arith.constant 8.000000e-01 : f32
    %324 = vector.broadcast %cst_121 : f32 to vector<8x32xf32>
    %325 = arith.mulf %324, %311 : vector<8x32xf32>
    %326 = arith.addf %325, %312 : vector<8x32xf32>
    %327 = vector.extract_strided_slice %249 {offsets = [40, 0], sizes = [8, 32], strides = [1, 1]} : vector<64x32xf32> to vector<8x32xf32>
    %cst_122 = arith.constant 0.899999976 : f32
    %328 = vector.broadcast %cst_122 : f32 to vector<8x32xf32>
    %329 = arith.mulf %328, %323 : vector<8x32xf32>
    %cst_123 = arith.constant 1.000000e-01 : f32
    %330 = vector.broadcast %cst_123 : f32 to vector<8x32xf32>
    %331 = arith.mulf %330, %326 : vector<8x32xf32>
    %332 = arith.addf %329, %331 : vector<8x32xf32>
    %cst_124 = arith.constant 1.000000e+00 : f32
    %333 = vector.broadcast %cst_124 : f32 to vector<8x32xf32>
    %334 = arith.cmpf ogt, %332, %333 : vector<8x32xf32>
    %335 = arith.extui %334 : vector<8x32xi1> to vector<8x32xi32>
    %336 = arith.sitofp %335 : vector<8x32xi32> to vector<8x32xf32>
    %cst_125 = arith.constant 0.000000e+00 : f32
    %337 = vector.broadcast %cst_125 : f32 to vector<8x32xf32>
    %338 = arith.select %334, %337, %332 : vector<8x32xi1>, vector<8x32xf32>
    %cst_126 = arith.constant 8.000000e-01 : f32
    %339 = vector.broadcast %cst_126 : f32 to vector<8x32xf32>
    %340 = arith.mulf %339, %326 : vector<8x32xf32>
    %341 = arith.addf %340, %327 : vector<8x32xf32>
    %342 = vector.extract_strided_slice %249 {offsets = [48, 0], sizes = [8, 32], strides = [1, 1]} : vector<64x32xf32> to vector<8x32xf32>
    %cst_127 = arith.constant 0.899999976 : f32
    %343 = vector.broadcast %cst_127 : f32 to vector<8x32xf32>
    %344 = arith.mulf %343, %338 : vector<8x32xf32>
    %cst_128 = arith.constant 1.000000e-01 : f32
    %345 = vector.broadcast %cst_128 : f32 to vector<8x32xf32>
    %346 = arith.mulf %345, %341 : vector<8x32xf32>
    %347 = arith.addf %344, %346 : vector<8x32xf32>
    %cst_129 = arith.constant 1.000000e+00 : f32
    %348 = vector.broadcast %cst_129 : f32 to vector<8x32xf32>
    %349 = arith.cmpf ogt, %347, %348 : vector<8x32xf32>
    %350 = arith.extui %349 : vector<8x32xi1> to vector<8x32xi32>
    %351 = arith.sitofp %350 : vector<8x32xi32> to vector<8x32xf32>
    %cst_130 = arith.constant 0.000000e+00 : f32
    %352 = vector.broadcast %cst_130 : f32 to vector<8x32xf32>
    %353 = arith.select %349, %352, %347 : vector<8x32xi1>, vector<8x32xf32>
    %cst_131 = arith.constant 8.000000e-01 : f32
    %354 = vector.broadcast %cst_131 : f32 to vector<8x32xf32>
    %355 = arith.mulf %354, %341 : vector<8x32xf32>
    %356 = arith.addf %355, %342 : vector<8x32xf32>
    %cst_132 = arith.constant 0.899999976 : f32
    %357 = vector.broadcast %cst_132 : f32 to vector<8x32xf32>
    %358 = arith.mulf %357, %353 : vector<8x32xf32>
    %cst_133 = arith.constant 1.000000e-01 : f32
    %359 = vector.broadcast %cst_133 : f32 to vector<8x32xf32>
    %360 = arith.mulf %359, %356 : vector<8x32xf32>
    %361 = arith.addf %358, %360 : vector<8x32xf32>
    %cst_134 = arith.constant 1.000000e+00 : f32
    %362 = vector.broadcast %cst_134 : f32 to vector<8x32xf32>
    %363 = arith.cmpf ogt, %361, %362 : vector<8x32xf32>
    %364 = arith.extui %363 : vector<8x32xi1> to vector<8x32xi32>
    %365 = arith.sitofp %364 : vector<8x32xi32> to vector<8x32xf32>
    %366 = tpu.concatenate %261, %276, %291, %306, %321, %336, %351, %365 in 0 : vector<8x32xf32>, vector<8x32xf32>, vector<8x32xf32>, vector<8x32xf32>, vector<8x32xf32>, vector<8x32xf32>, vector<8x32xf32>, vector<8x32xf32> -> vector<64x32xf32>
    %c0_135 = arith.constant 0 : index
    %c0_136 = arith.constant 0 : index
    %367 = vector.load %arg8[%c0_135, %c0_136] : memref<32x16xf32, #tpu.memory_space<vmem>>, vector<32x16xf32>
    %cst_137 = arith.constant dense<0.000000e+00> : vector<64x16xf32>
    %368 = tpu.matmul %366, %367, %cst_137 {dimension_numbers = #tpu.dot_dimension_numbers<[1], [0], [0], [1], [0, 0, 1, 1], [], []>} : vector<64x32xf32>, vector<32x16xf32>, vector<64x16xf32> -> vector<64x16xf32>
    %c0_138 = arith.constant 0 : index
    %c0_139 = arith.constant 0 : index
    %369 = vector.load %arg9[%c0_138, %c0_139] : memref<1x16xf32, #tpu.memory_space<vmem>>, vector<1x16xf32>
    %370 = vector.broadcast %369 : vector<1x16xf32> to vector<64x16xf32>
    %371 = arith.addf %368, %370 : vector<64x16xf32>
    %cst_140 = arith.constant 0.000000e+00 : f32
    %372 = vector.broadcast %cst_140 : f32 to vector<8x16xf32>
    %cst_141 = arith.constant 0.000000e+00 : f32
    %373 = vector.broadcast %cst_141 : f32 to vector<8x16xf32>
    %cst_142 = arith.constant 0.000000e+00 : f32
    %374 = vector.broadcast %cst_142 : f32 to vector<8x16xf32>
    %375 = vector.extract_strided_slice %371 {offsets = [0, 0], sizes = [8, 16], strides = [1, 1]} : vector<64x16xf32> to vector<8x16xf32>
    %cst_143 = arith.constant 0.899999976 : f32
    %376 = vector.broadcast %cst_143 : f32 to vector<8x16xf32>
    %377 = arith.mulf %376, %372 : vector<8x16xf32>
    %cst_144 = arith.constant 1.000000e-01 : f32
    %378 = vector.broadcast %cst_144 : f32 to vector<8x16xf32>
    %379 = arith.mulf %378, %373 : vector<8x16xf32>
    %380 = arith.addf %377, %379 : vector<8x16xf32>
    %cst_145 = arith.constant 1.000000e+00 : f32
    %381 = vector.broadcast %cst_145 : f32 to vector<8x16xf32>
    %382 = arith.cmpf ogt, %380, %381 : vector<8x16xf32>
    %383 = arith.extui %382 : vector<8x16xi1> to vector<8x16xi32>
    %384 = arith.sitofp %383 : vector<8x16xi32> to vector<8x16xf32>
    %cst_146 = arith.constant 0.000000e+00 : f32
    %385 = vector.broadcast %cst_146 : f32 to vector<8x16xf32>
    %386 = arith.select %382, %385, %380 : vector<8x16xi1>, vector<8x16xf32>
    %cst_147 = arith.constant 8.000000e-01 : f32
    %387 = vector.broadcast %cst_147 : f32 to vector<8x16xf32>
    %388 = arith.mulf %387, %373 : vector<8x16xf32>
    %389 = arith.addf %388, %375 : vector<8x16xf32>
    %390 = arith.addf %374, %384 : vector<8x16xf32>
    %391 = vector.extract_strided_slice %371 {offsets = [8, 0], sizes = [8, 16], strides = [1, 1]} : vector<64x16xf32> to vector<8x16xf32>
    %cst_148 = arith.constant 0.899999976 : f32
    %392 = vector.broadcast %cst_148 : f32 to vector<8x16xf32>
    %393 = arith.mulf %392, %386 : vector<8x16xf32>
    %cst_149 = arith.constant 1.000000e-01 : f32
    %394 = vector.broadcast %cst_149 : f32 to vector<8x16xf32>
    %395 = arith.mulf %394, %389 : vector<8x16xf32>
    %396 = arith.addf %393, %395 : vector<8x16xf32>
    %cst_150 = arith.constant 1.000000e+00 : f32
    %397 = vector.broadcast %cst_150 : f32 to vector<8x16xf32>
    %398 = arith.cmpf ogt, %396, %397 : vector<8x16xf32>
    %399 = arith.extui %398 : vector<8x16xi1> to vector<8x16xi32>
    %400 = arith.sitofp %399 : vector<8x16xi32> to vector<8x16xf32>
    %cst_151 = arith.constant 0.000000e+00 : f32
    %401 = vector.broadcast %cst_151 : f32 to vector<8x16xf32>
    %402 = arith.select %398, %401, %396 : vector<8x16xi1>, vector<8x16xf32>
    %cst_152 = arith.constant 8.000000e-01 : f32
    %403 = vector.broadcast %cst_152 : f32 to vector<8x16xf32>
    %404 = arith.mulf %403, %389 : vector<8x16xf32>
    %405 = arith.addf %404, %391 : vector<8x16xf32>
    %406 = arith.addf %390, %400 : vector<8x16xf32>
    %407 = vector.extract_strided_slice %371 {offsets = [16, 0], sizes = [8, 16], strides = [1, 1]} : vector<64x16xf32> to vector<8x16xf32>
    %cst_153 = arith.constant 0.899999976 : f32
    %408 = vector.broadcast %cst_153 : f32 to vector<8x16xf32>
    %409 = arith.mulf %408, %402 : vector<8x16xf32>
    %cst_154 = arith.constant 1.000000e-01 : f32
    %410 = vector.broadcast %cst_154 : f32 to vector<8x16xf32>
    %411 = arith.mulf %410, %405 : vector<8x16xf32>
    %412 = arith.addf %409, %411 : vector<8x16xf32>
    %cst_155 = arith.constant 1.000000e+00 : f32
    %413 = vector.broadcast %cst_155 : f32 to vector<8x16xf32>
    %414 = arith.cmpf ogt, %412, %413 : vector<8x16xf32>
    %415 = arith.extui %414 : vector<8x16xi1> to vector<8x16xi32>
    %416 = arith.sitofp %415 : vector<8x16xi32> to vector<8x16xf32>
    %cst_156 = arith.constant 0.000000e+00 : f32
    %417 = vector.broadcast %cst_156 : f32 to vector<8x16xf32>
    %418 = arith.select %414, %417, %412 : vector<8x16xi1>, vector<8x16xf32>
    %cst_157 = arith.constant 8.000000e-01 : f32
    %419 = vector.broadcast %cst_157 : f32 to vector<8x16xf32>
    %420 = arith.mulf %419, %405 : vector<8x16xf32>
    %421 = arith.addf %420, %407 : vector<8x16xf32>
    %422 = arith.addf %406, %416 : vector<8x16xf32>
    %423 = vector.extract_strided_slice %371 {offsets = [24, 0], sizes = [8, 16], strides = [1, 1]} : vector<64x16xf32> to vector<8x16xf32>
    %cst_158 = arith.constant 0.899999976 : f32
    %424 = vector.broadcast %cst_158 : f32 to vector<8x16xf32>
    %425 = arith.mulf %424, %418 : vector<8x16xf32>
    %cst_159 = arith.constant 1.000000e-01 : f32
    %426 = vector.broadcast %cst_159 : f32 to vector<8x16xf32>
    %427 = arith.mulf %426, %421 : vector<8x16xf32>
    %428 = arith.addf %425, %427 : vector<8x16xf32>
    %cst_160 = arith.constant 1.000000e+00 : f32
    %429 = vector.broadcast %cst_160 : f32 to vector<8x16xf32>
    %430 = arith.cmpf ogt, %428, %429 : vector<8x16xf32>
    %431 = arith.extui %430 : vector<8x16xi1> to vector<8x16xi32>
    %432 = arith.sitofp %431 : vector<8x16xi32> to vector<8x16xf32>
    %cst_161 = arith.constant 0.000000e+00 : f32
    %433 = vector.broadcast %cst_161 : f32 to vector<8x16xf32>
    %434 = arith.select %430, %433, %428 : vector<8x16xi1>, vector<8x16xf32>
    %cst_162 = arith.constant 8.000000e-01 : f32
    %435 = vector.broadcast %cst_162 : f32 to vector<8x16xf32>
    %436 = arith.mulf %435, %421 : vector<8x16xf32>
    %437 = arith.addf %436, %423 : vector<8x16xf32>
    %438 = arith.addf %422, %432 : vector<8x16xf32>
    %439 = vector.extract_strided_slice %371 {offsets = [32, 0], sizes = [8, 16], strides = [1, 1]} : vector<64x16xf32> to vector<8x16xf32>
    %cst_163 = arith.constant 0.899999976 : f32
    %440 = vector.broadcast %cst_163 : f32 to vector<8x16xf32>
    %441 = arith.mulf %440, %434 : vector<8x16xf32>
    %cst_164 = arith.constant 1.000000e-01 : f32
    %442 = vector.broadcast %cst_164 : f32 to vector<8x16xf32>
    %443 = arith.mulf %442, %437 : vector<8x16xf32>
    %444 = arith.addf %441, %443 : vector<8x16xf32>
    %cst_165 = arith.constant 1.000000e+00 : f32
    %445 = vector.broadcast %cst_165 : f32 to vector<8x16xf32>
    %446 = arith.cmpf ogt, %444, %445 : vector<8x16xf32>
    %447 = arith.extui %446 : vector<8x16xi1> to vector<8x16xi32>
    %448 = arith.sitofp %447 : vector<8x16xi32> to vector<8x16xf32>
    %cst_166 = arith.constant 0.000000e+00 : f32
    %449 = vector.broadcast %cst_166 : f32 to vector<8x16xf32>
    %450 = arith.select %446, %449, %444 : vector<8x16xi1>, vector<8x16xf32>
    %cst_167 = arith.constant 8.000000e-01 : f32
    %451 = vector.broadcast %cst_167 : f32 to vector<8x16xf32>
    %452 = arith.mulf %451, %437 : vector<8x16xf32>
    %453 = arith.addf %452, %439 : vector<8x16xf32>
    %454 = arith.addf %438, %448 : vector<8x16xf32>
    %455 = vector.extract_strided_slice %371 {offsets = [40, 0], sizes = [8, 16], strides = [1, 1]} : vector<64x16xf32> to vector<8x16xf32>
    %cst_168 = arith.constant 0.899999976 : f32
    %456 = vector.broadcast %cst_168 : f32 to vector<8x16xf32>
    %457 = arith.mulf %456, %450 : vector<8x16xf32>
    %cst_169 = arith.constant 1.000000e-01 : f32
    %458 = vector.broadcast %cst_169 : f32 to vector<8x16xf32>
    %459 = arith.mulf %458, %453 : vector<8x16xf32>
    %460 = arith.addf %457, %459 : vector<8x16xf32>
    %cst_170 = arith.constant 1.000000e+00 : f32
    %461 = vector.broadcast %cst_170 : f32 to vector<8x16xf32>
    %462 = arith.cmpf ogt, %460, %461 : vector<8x16xf32>
    %463 = arith.extui %462 : vector<8x16xi1> to vector<8x16xi32>
    %464 = arith.sitofp %463 : vector<8x16xi32> to vector<8x16xf32>
    %cst_171 = arith.constant 0.000000e+00 : f32
    %465 = vector.broadcast %cst_171 : f32 to vector<8x16xf32>
    %466 = arith.select %462, %465, %460 : vector<8x16xi1>, vector<8x16xf32>
    %cst_172 = arith.constant 8.000000e-01 : f32
    %467 = vector.broadcast %cst_172 : f32 to vector<8x16xf32>
    %468 = arith.mulf %467, %453 : vector<8x16xf32>
    %469 = arith.addf %468, %455 : vector<8x16xf32>
    %470 = arith.addf %454, %464 : vector<8x16xf32>
    %471 = vector.extract_strided_slice %371 {offsets = [48, 0], sizes = [8, 16], strides = [1, 1]} : vector<64x16xf32> to vector<8x16xf32>
    %cst_173 = arith.constant 0.899999976 : f32
    %472 = vector.broadcast %cst_173 : f32 to vector<8x16xf32>
    %473 = arith.mulf %472, %466 : vector<8x16xf32>
    %cst_174 = arith.constant 1.000000e-01 : f32
    %474 = vector.broadcast %cst_174 : f32 to vector<8x16xf32>
    %475 = arith.mulf %474, %469 : vector<8x16xf32>
    %476 = arith.addf %473, %475 : vector<8x16xf32>
    %cst_175 = arith.constant 1.000000e+00 : f32
    %477 = vector.broadcast %cst_175 : f32 to vector<8x16xf32>
    %478 = arith.cmpf ogt, %476, %477 : vector<8x16xf32>
    %479 = arith.extui %478 : vector<8x16xi1> to vector<8x16xi32>
    %480 = arith.sitofp %479 : vector<8x16xi32> to vector<8x16xf32>
    %cst_176 = arith.constant 0.000000e+00 : f32
    %481 = vector.broadcast %cst_176 : f32 to vector<8x16xf32>
    %482 = arith.select %478, %481, %476 : vector<8x16xi1>, vector<8x16xf32>
    %cst_177 = arith.constant 8.000000e-01 : f32
    %483 = vector.broadcast %cst_177 : f32 to vector<8x16xf32>
    %484 = arith.mulf %483, %469 : vector<8x16xf32>
    %485 = arith.addf %484, %471 : vector<8x16xf32>
    %486 = arith.addf %470, %480 : vector<8x16xf32>
    %cst_178 = arith.constant 0.899999976 : f32
    %487 = vector.broadcast %cst_178 : f32 to vector<8x16xf32>
    %488 = arith.mulf %487, %482 : vector<8x16xf32>
    %cst_179 = arith.constant 1.000000e-01 : f32
    %489 = vector.broadcast %cst_179 : f32 to vector<8x16xf32>
    %490 = arith.mulf %489, %485 : vector<8x16xf32>
    %491 = arith.addf %488, %490 : vector<8x16xf32>
    %cst_180 = arith.constant 1.000000e+00 : f32
    %492 = vector.broadcast %cst_180 : f32 to vector<8x16xf32>
    %493 = arith.cmpf ogt, %491, %492 : vector<8x16xf32>
    %494 = arith.extui %493 : vector<8x16xi1> to vector<8x16xi32>
    %495 = arith.sitofp %494 : vector<8x16xi32> to vector<8x16xf32>
    %496 = arith.addf %486, %495 : vector<8x16xf32>
    %c0_181 = arith.constant 0 : index
    %c0_182 = arith.constant 0 : index
    %497 = vector.load %arg10[%c0_181, %c0_182] : memref<16x128xf32, #tpu.memory_space<vmem>>, vector<16x128xf32>
    %cst_183 = arith.constant dense<0.000000e+00> : vector<8x128xf32>
    %498 = tpu.matmul %496, %497, %cst_183 {dimension_numbers = #tpu.dot_dimension_numbers<[1], [0], [0], [1], [0, 0, 1, 1], [], []>} : vector<8x16xf32>, vector<16x128xf32>, vector<8x128xf32> -> vector<8x128xf32>
    %c0_184 = arith.constant 0 : index
    %c0_185 = arith.constant 0 : index
    %499 = vector.load %arg11[%c0_184, %c0_185] : memref<1x128xf32, #tpu.memory_space<vmem>>, vector<1x128xf32>
    %cst_186 = arith.constant 8.000000e+00 : f32
    %500 = vector.broadcast %cst_186 : f32 to vector<1x128xf32>
    %501 = arith.mulf %500, %499 : vector<1x128xf32>
    %502 = vector.broadcast %501 : vector<1x128xf32> to vector<8x128xf32>
    %503 = arith.addf %498, %502 : vector<8x128xf32>
    %c0_187 = arith.constant 0 : index
    %c0_188 = arith.constant 0 : index
    %504 = vector.load %arg12[%c0_187, %c0_188] : memref<8x128xf32, #tpu.memory_space<vmem>>, vector<8x128xf32>
    tpu.vector_store %arg12[%c0_187, %c0_188], %503 {strides = array<i32>} : memref<8x128xf32, #tpu.memory_space<vmem>>, vector<8x128xf32>,
    return
  }
  func.func @transform_0(%arg0: i32) -> (i32, i32) {
    %c0_i32 = arith.constant 0 : i32
    %c0_i32_0 = arith.constant 0 : i32
    %c0_i32_1 = arith.constant 0 : i32
    return %c0_i32, %c0_i32_0 : i32, i32
  }
  func.func @transform_1(%arg0: i32) -> (i32, i32) {
    %c0_i32 = arith.constant 0 : i32
    %c0_i32_0 = arith.constant 0 : i32
    %c0_i32_1 = arith.constant 0 : i32
    return %c0_i32, %c0_i32_0 : i32, i32
  }
  func.func @transform_2(%arg0: i32) -> (i32, i32) {
    %c0_i32 = arith.constant 0 : i32
    %c0_i32_0 = arith.constant 0 : i32
    %c0_i32_1 = arith.constant 0 : i32
    return %c0_i32, %c0_i32_0 : i32, i32
  }
  func.func @transform_3(%arg0: i32) -> (i32, i32) {
    %c0_i32 = arith.constant 0 : i32
    %c0_i32_0 = arith.constant 0 : i32
    %c0_i32_1 = arith.constant 0 : i32
    return %c0_i32, %c0_i32_0 : i32, i32
  }
  func.func @transform_4(%arg0: i32) -> (i32, i32) {
    %c0_i32 = arith.constant 0 : i32
    %c0_i32_0 = arith.constant 0 : i32
    %c0_i32_1 = arith.constant 0 : i32
    return %c0_i32, %c0_i32_0 : i32, i32
  }
  func.func @transform_5(%arg0: i32) -> (i32, i32) {
    %c0_i32 = arith.constant 0 : i32
    %c0_i32_0 = arith.constant 0 : i32
    %c0_i32_1 = arith.constant 0 : i32
    return %c0_i32, %c0_i32_0 : i32, i32
  }
  func.func @transform_6(%arg0: i32) -> (i32, i32) {
    %c0_i32 = arith.constant 0 : i32
    %c0_i32_0 = arith.constant 0 : i32
    %c0_i32_1 = arith.constant 0 : i32
    return %c0_i32, %c0_i32_0 : i32, i32
  }
  func.func @transform_7(%arg0: i32) -> (i32, i32) {
    %c0_i32 = arith.constant 0 : i32
    %c0_i32_0 = arith.constant 0 : i32
    %c0_i32_1 = arith.constant 0 : i32
    return %c0_i32, %c0_i32_0 : i32, i32
  }
  func.func @transform_8(%arg0: i32) -> (i32, i32) {
    %c0_i32 = arith.constant 0 : i32
    %c0_i32_0 = arith.constant 0 : i32
    %c0_i32_1 = arith.constant 0 : i32
    return %c0_i32, %c0_i32_0 : i32, i32
  }
  func.func @transform_9(%arg0: i32) -> (i32, i32) {
    %c0_i32 = arith.constant 0 : i32
    %c0_i32_0 = arith.constant 0 : i32
    %c0_i32_1 = arith.constant 0 : i32
    return %c0_i32, %c0_i32_0 : i32, i32
  }
  func.func @transform_10(%arg0: i32) -> (i32, i32) {
    %c0_i32 = arith.constant 0 : i32
    %c0_i32_0 = arith.constant 0 : i32
    %c0_i32_1 = arith.constant 0 : i32
    return %c0_i32, %c0_i32_0 : i32, i32
  }
  func.func @transform_11(%arg0: i32) -> (i32, i32) {
    %c0_i32 = arith.constant 0 : i32
    %c0_i32_0 = arith.constant 0 : i32
    %c0_i32_1 = arith.constant 0 : i32
    return %c0_i32, %c0_i32_0 : i32, i32
  }
}

</mosaic_0001>

<bundles_post_ra>
// kernel: tpu_custom_call.1
= control target key start
LH: loop header
LB: loop body
LE: loop exit
PB: predicated region body
PF: predicated region fallthrough
CT: control target
= control target key end

     0   :  { %vm80_vm0 = vcmask 1043456   ;;  %vm55_vm1 = vcmask 31744   ;;  %s1532_s0 = inlined_call_operand.vmem [shape: f32[64,4], index: 0, kind: input, shape index: {}]   ;;  %s1533_s1 = inlined_call_operand.vmem [shape: f32[4,128], index: 1, kind: input, shape index: {}]   ;;  %s1534_s2 = inlined_call_operand.vmem [shape: f32[1,128], index: 2, kind: input, shape index: {}]   ;;  %s1535_s3 = inlined_call_operand.vmem [shape: f32[128,64], index: 3, kind: input, shape index: {}]   ;;  %s1536_s4 = inlined_call_operand.vmem [shape: f32[1,64], index: 4, kind: input, shape index: {}]   ;;  %s1537_s5 = inlined_call_operand.vmem [shape: f32[64,32], index: 5, kind: input, shape index: {}]   ;;  %s1538_s6 = inlined_call_operand.vmem [shape: f32[1,32], index: 6, kind: input, shape index: {}]   ;;  %s1539_s7 = inlined_call_operand.vmem [shape: f32[32,16], index: 7, kind: input, shape index: {}]   ;;  %s1540_s8 = inlined_call_operand.vmem [shape: f32[1,16], index: 8, kind: input, shape index: {}]   ;;  %s1541_s9 = inlined_call_operand.vmem [shape: f32[16,128], index: 9, kind: input, shape index: {}]   ;;  %s1542_s10 = inlined_call_operand.vmem [shape: f32[1,128], index: 10, kind: input, shape index: {}]   ;;  %s1543_s11 = inlined_call_operand.hbm [shape: f32[8,128], index: 11, kind: output, shape index: {}]  }
   0x1   :  { %v47_v0 = vld [vmem:[%s1533_s1] sm:$0xf]  ;;  %v40_v2 = vld [vmem:[%s1532_s0 + $0x8] sm:$0xff]  ;;  %v41_v3 = vld [vmem:[%s1532_s0 + $0x10] sm:$0xff] }
   0x2   :  { %v39_v1 = vld [vmem:[%s1532_s0] sm:$0xff]  ;;  %1075 = vmatprep.subr.msk.mxu0 %vm80_vm0, %v47_v0  ;;  %v252_v5 = vld [vmem:[%s1535_s3 + $0x8] sm:$0xff]  ;;  %v253_v6 = vld [vmem:[%s1535_s3 + $0x10] sm:$0xff] }
   0x3   :  { %1077 = vmatprep.mubr.msk.f32.mxu0 %vm55_vm1, %v39_v1  ;;  %1076 = vmatpush3.msk.msra.mxu0 %vm80_vm0, %v47_v0  ;;  %v251_v4 = vld [vmem:[%s1535_s3] sm:$0xff]  ;;  %v42_v7 = vld [vmem:[%s1532_s0 + $0x18] sm:$0xff]  ;;  %v256_v13 = vld [vmem:[%s1535_s3 + $0x28] sm:$0xff] }
   0x4   :  { %1078 = vmatmul.mubr.msk.f32.vlgmr.msra.gmra.mrb[0].mxu0 %vm55_vm1, %v40_v2  ;;  %v1188_v8 = vpack.c.bf16 %v252_v5, %v251_v4  ;;  %v254_v9 = vld [vmem:[%s1535_s3 + $0x18] sm:$0xff]  ;;  %v43_v10 = vld [vmem:[%s1532_s0 + $0x20] sm:$0xff] }
   0x5   :  { %1080 = vmatprep.mubr.msk.f32.mxu0 %vm55_vm1, %v41_v3  ;;  %v1192_v11 = vpack.c.bf16 %v254_v9, %v253_v6  ;;  %v255_v12 = vld [vmem:[%s1535_s3 + $0x20] sm:$0xff] }
   0x6   :  { %1189 = vmatprep.subr.bf16.mxu1 %v1188_v8 }
   0x7   :  { %1191 = vmatpush3.bf16.msra.mxu1 %v1188_v8 }
   0x8   :  { %1081 = vmatmul.mubr.msk.f32.gmra.mrb[2].mxu0 %vm55_vm1, %v42_v7 }
   0x9   :  { %16 = vsyncpa [#allocation3], 0  ;;  %1083 = vmatprep.mubr.msk.f32.mxu0 %vm55_vm1, %v43_v10  ;;  %v44_v14 = vld [vmem:[%s1532_s0 + $0x28] sm:$0xff]  ;;  %1193 = vmatprep.subr.bf16.mxu1 %v1192_v11  ;;  %v1196_v15 = vpack.c.bf16 %v256_v13, %v255_v12  ;;  %v45_v16 = vld [vmem:[%s1532_s0 + $0x30] sm:$0xff]  ;;  %v1276_v33 = vmov 0.0   ;;  %v1277_v52 = vmov 1.0  }
   0xa   :  { %v257_v17 = vld [vmem:[%s1535_s3 + $0x30] sm:$0xff]  ;;  %v258_v18 = vld [vmem:[%s1535_s3 + $0x38] sm:$0xff]  ;;  %v259_v21 = vld [vmem:[%s1535_s3 + $0x40] sm:$0xff]  ;;  %1121 = vmatprep.mubr.f32.mxu1 %v1276_v33  ;;  %vm453_vm9 = vcmask 523264   ;;  %s1280_s14 = smov [#allocation2]  }
   0xb   :  { %1195 = vmatpush3.bf16.msra.mxu1 %v1192_v11  ;;  %v46_v19 = vld [vmem:[%s1532_s0 + $0x38] sm:$0xff]  ;;  %v1200_v20 = vpack.c.bf16 %v258_v18, %v257_v17  ;;  %v260_v22 = vld [vmem:[%s1535_s3 + $0x48] sm:$0xff]  ;;  %v261_v24 = vld [vmem:[%s1535_s3 + $0x50] sm:$0xff] }
   0xc   :  { %1084 = vmatmul.mubr.msk.f32.gmra.mrb[4].mxu0 %vm55_vm1, %v44_v14  ;;  %1197 = vmatprep.subr.bf16.mxu1 %v1196_v15  ;;  %v1204_v23 = vpack.c.bf16 %v260_v22, %v259_v21  ;;  %v262_v25 = vld [vmem:[%s1535_s3 + $0x58] sm:$0xff]  ;;  %v263_v27 = vld [vmem:[%s1535_s3 + $0x60] sm:$0xff]  ;;  %v264_v28 = vld [vmem:[%s1535_s3 + $0x68] sm:$0xff] }
   0xd   :  { %1086 = vmatprep.mubr.msk.f32.mxu0 %vm55_vm1, %v45_v16  ;;  %v1208_v26 = vpack.c.bf16 %v262_v25, %v261_v24  ;;  %v1212_v29 = vpack.c.bf16 %v264_v28, %v263_v27  ;;  %v265_v30 = vld [vmem:[%s1535_s3 + $0x70] sm:$0xff]  ;;  %v266_v31 = vld [vmem:[%s1535_s3 + $0x78] sm:$0xff]  ;;  %v438_v34 = vld [vmem:[%s1537_s5] sm:$0xff] }
   0xe   :  { %v1216_v32 = vpack.c.bf16 %v266_v31, %v265_v30  ;;  %v439_v35 = vld [vmem:[%s1537_s5 + $0x8] sm:$0xff]  ;;  %v440_v36 = vld [vmem:[%s1537_s5 + $0x10] sm:$0xff]  ;;  %v441_v38 = vld [vmem:[%s1537_s5 + $0x18] sm:$0xff] }
   0xf   :  { %1199 = vmatpush3.bf16.msra.mxu1 %v1196_v15  ;;  %v1220_v37 = vpack.c.bf16 %v439_v35, %v438_v34  ;;  %v1224_v39 = vpack.c.bf16 %v441_v38, %v440_v36  ;;  %v948_v40 = vld [vmem:[%s1534_s2] ss:$0 sm:$0xff]  ;;  %v443_v31 = vld [vmem:[%s1537_s5 + $0x28] sm:$0xff]  ;;  %v444_v34 = vld [vmem:[%s1537_s5 + $0x30] sm:$0xff]  ;;  %s940_s2 = sshll.u32 %s1280_s14, 4  ;;  %s941_s2 = int_to_ptr.vmem [resolvable:$true] %s940_s2 }
  0x10   :  { %1087 = vmatmul.mubr.msk.f32.gmra.mrb[6].mxu0 %vm55_vm1, %v46_v19  ;;  %1201 = vmatprep.subr.bf16.mxu1 %v1200_v20  ;;  %v442_v30 = vld [vmem:[%s1537_s5 + $0x20] sm:$0xff]  ;;  %v445_v35 = vld [vmem:[%s1537_s5 + $0x38] sm:$0xff]  ;;  %vm653_vm1 = vcmask 261120   ;;  %s1252_s15 = scalar_lea.vmem %s941_s2, 128  ;;  %p1257_p1 = scmp.lt.s32.totalorder %s941_s2, %s941_s2 }
  0x11   :  { %1149 = vmatprep.mubr.f32.mxu0 %v1276_v33  ;;  %1221 = vmatprep.subr.bf16.mxu0 %v1220_v37  ;;  %v1232_v36 = vpack.c.bf16 %v445_v35, %v444_v34  ;;  %v642_v34 = vld [vmem:[%s1539_s7] sm:$0xff]  ;;  %v643_v35 = vld [vmem:[%s1539_s7 + $0x8] sm:$0xff]  ;;  %p1253_p0 = scmp.ne.s32.totalorder %s941_s2, %s1252_s15  ;;  %p1258_p2 = scmp.lt.s32.totalorder %s1252_s15, %s1252_s15 }
  0x12   :  { %1223 = vmatpush3.bf16.msra.mxu0 %v1220_v37  ;;  %v965_v37 = vld [vmem:[%s1536_s4] ss:$0 sm:$0xff] }
  0x13   :  { %1203 = vmatpush3.bf16.msra.mxu1 %v1200_v20  ;;  %1225 = vmatprep.subr.bf16.mxu0 %v1224_v39  ;;  %p1259_p3 = por %p1258_p2, %p1257_p1 }
  0x14   :  { %1205 = vmatprep.subr.bf16.mxu1 %v1204_v23 }
  0x15   :  { %p1260_p4 = pnand %p1259_p3, %p1253_p0 }
  0x16   :  { %1227 = vmatpush3.bf16.msra.mxu0 %v1224_v39 }
  0x17   :  { %1207 = vmatpush3.bf16.msra.mxu1 %v1204_v23 }
  0x18   :  { %1209 = vmatprep.subr.bf16.mxu1 %v1208_v26 }
  0x1b   :  { %1211 = vmatpush3.bf16.msra.mxu1 %v1208_v26 }
  0x1c   :  { %1213 = vmatprep.subr.bf16.mxu1 %v1212_v29 }
  0x1f   :  { %1215 = vmatpush3.bf16.msra.mxu1 %v1212_v29 }
  0x20   :  { %1217 = vmatprep.subr.bf16.mxu1 %v1216_v32 }
  0x23   :  { %1219 = vmatpush3.bf16.msra.mxu1 %v1216_v32  ;;  %v1228_v32 = vpack.c.bf16 %v443_v31, %v442_v30 }
  0x25   :  { %1229 = vmatprep.subr.bf16.mxu0 %v1228_v32 }
  0x26   :  { %1231 = vmatpush3.bf16.msra.mxu0 %v1228_v32 }
  0x27   :  { %1233 = vmatprep.subr.bf16.mxu0 %v1232_v36 }
  0x2a   :  { %1235 = vmatpush3.bf16.msra.mxu0 %v1232_v36  ;;  %v1236_v36 = vpack.c.bf16 %v643_v35, %v642_v34 }
  0x2c   :  { %1237 = vmatprep.subr.bf16.mxu0 %v1236_v36 }
  0xd7   :  { %v1079_v41 = vpop.f32.mrb[0].mxu0 }
  0xd8   :  { %v150_v42 = vpop.f32.mrb[1].mxu0  ;;  %v156_v44 = vadd.f32 %v1079_v41, %v948_v40 }
  0xd9   :  { %v151_v43 = vadd.f32 %v948_v40, %v150_v42 }
  0xdb   :  { %v192_v45 = vmul.f32 0.1, %v151_v43  ;;  %v198_v46 = vmul.f32 0.8, %v151_v43  ;;  %v1082_v47 = vpop.f32.mrb[2].mxu0 }
  0xdc   :  { %v160_v48 = vpop.f32.mrb[3].mxu0  ;;  %v166_v60 = vadd.f32 %v1082_v47, %v948_v40 }
  0xdd   :  { %v199_v49 = vadd.f32 %v198_v46, %v156_v44  ;;  %v161_v50 = vadd.f32 %v948_v40, %v160_v48  ;;  %vm194_vm2 = vcmp.gt.f32.partialorder %v192_v45, 1.0 }
  0xde   :  { %v197_v51 = vsel %vm194_vm2, 0.0, %v192_v45  ;;  %1122 = vmatmul.mubr.msk.f32.vlgmr.msra.gmra.mrb[0].mxu1 %vm194_vm2, %v1277_v52 }
  0xdf   :  { %v201_v53 = vmul.f32 0.1, %v199_v49  ;;  %v207_v54 = vmul.f32 0.8, %v199_v49  ;;  %v200_v55 = vmul.f32 0.9, %v197_v51 }
  0xe0   :  { %v1085_v56 = vpop.f32.mrb[4].mxu0 }
  0xe1   :  { %v208_v57 = vadd.f32 %v207_v54, %v161_v50  ;;  %v202_v58 = vadd.f32 %v201_v53, %v200_v55  ;;  %v170_v59 = vpop.f32.mrb[5].mxu0  ;;  %v176_v7 = vadd.f32 %v1085_v56, %v948_v40 }
  0xe2   :  { %v171_v3 = vadd.f32 %v948_v40, %v170_v59 }
  0xe3   :  { %v216_v61 = vmul.f32 0.8, %v208_v57  ;;  %vm203_vm3 = vcmp.gt.f32.partialorder %v202_v58, 1.0  ;;  %v1088_v62 = vpop.f32.mrb[6].mxu0  ;;  %v210_v1 = vmul.f32 0.1, %v208_v57 }
  0xe4   :  { %v206_v63 = vsel %vm203_vm3, 0.0, %v202_v58  ;;  %1124 = vmatprep.mubr.msk.f32.mxu1 %vm203_vm3, %v1277_v52  ;;  %v180_v0 = vpop.f32.mrb[7].mxu0 }
  0xe5   :  { %v209_v2 = vmul.f32 0.9, %v206_v63  ;;  %v217_v4 = vadd.f32 %v216_v61, %v166_v60  ;;  %v181_v13 = vadd.f32 %v948_v40, %v180_v0 }
  0xe7   :  { %v225_v5 = vmul.f32 0.8, %v217_v4  ;;  %v211_v6 = vadd.f32 %v210_v1, %v209_v2  ;;  %v219_v12 = vmul.f32 0.1, %v217_v4 }
  0xe9   :  { %v226_v8 = vadd.f32 %v225_v5, %v171_v3  ;;  %vm212_vm4 = vcmp.gt.f32.partialorder %v211_v6, 1.0 }
  0xea   :  { %v215_v9 = vsel %vm212_vm4, 0.0, %v211_v6  ;;  %1125 = vmatmul.mubr.msk.f32.gmra.mrb[2].mxu1 %vm212_vm4, %v1277_v52 }
  0xeb   :  { %v234_v10 = vmul.f32 0.8, %v226_v8  ;;  %v218_v11 = vmul.f32 0.9, %v215_v9  ;;  %v228_v18 = vmul.f32 0.1, %v226_v8 }
  0xed   :  { %v235_v14 = vadd.f32 %v234_v10, %v176_v7  ;;  %v220_v15 = vadd.f32 %v219_v12, %v218_v11 }
  0xef   :  { %v243_v16 = vmul.f32 0.8, %v235_v14  ;;  %vm221_vm5 = vcmp.gt.f32.partialorder %v220_v15, 1.0  ;;  %v237_v24 = vmul.f32 0.1, %v235_v14 }
  0xf0   :  { %v224_v17 = vsel %vm221_vm5, 0.0, %v220_v15  ;;  %1127 = vmatprep.mubr.msk.f32.mxu1 %vm221_vm5, %v1277_v52 }
  0xf1   :  { %v244_v19 = vadd.f32 %v243_v16, %v181_v13  ;;  %v227_v20 = vmul.f32 0.9, %v224_v17 }
  0xf3   :  { %v229_v21 = vadd.f32 %v228_v18, %v227_v20  ;;  %v246_v27 = vmul.f32 0.1, %v244_v19 }
  0xf5   :  { %vm230_vm6 = vcmp.gt.f32.partialorder %v229_v21, 1.0 }
  0xf6   :  { %v233_v22 = vsel %vm230_vm6, 0.0, %v229_v21  ;;  %1128 = vmatmul.mubr.msk.f32.gmra.mrb[4].mxu1 %vm230_vm6, %v1277_v52 }
  0xf7   :  { %v236_v23 = vmul.f32 0.9, %v233_v22 }
  0xf9   :  { %v238_v25 = vadd.f32 %v237_v24, %v236_v23 }
  0xfb   :  { %vm239_vm7 = vcmp.gt.f32.partialorder %v238_v25, 1.0 }
  0xfc   :  { %v242_v26 = vsel %vm239_vm7, 0.0, %v238_v25  ;;  %1130 = vmatprep.mubr.msk.f32.mxu1 %vm239_vm7, %v1277_v52 }
  0xfd   :  { %v245_v28 = vmul.f32 0.9, %v242_v26 }
  0xff   :  { %v247_v29 = vadd.f32 %v246_v27, %v245_v28 }
 0x101   :  { %vm248_vm8 = vcmp.gt.f32.partialorder %v247_v29, 1.0 }
 0x102   :  { %1131 = vmatmul.mubr.msk.f32.gmra.mrb[6].mxu1 %vm248_vm8, %v1277_v52 }
 0x1b1   :  { %v1123_v38 = vpop.f32.mrb[0].mxu1 }
 0x1b2   :  { %v340_v39 = vpop.f32.mrb[1].mxu1  ;;  %v346_v41 = vadd.f32 %v1123_v38, %v965_v37  ;;  %v645_v38 = vld [vmem:[%s1539_s7 + $0x18] sm:$0xff] }
 0x1b3   :  { %v341_v40 = vadd.f32 %v965_v37, %v340_v39 }
 0x1b5   :  { %v379_v42 = vmul.f32 0.1, %v341_v40  ;;  %v385_v43 = vmul.f32 0.8, %v341_v40  ;;  %v980_v40 = vld [vmem:[%s1538_s6] ss:$0 sm:$0xff] }
 0x1b7   :  { %vm381_vm10 = vcmp.gt.f32.partialorder %v379_v42, 1.0  ;;  %v386_v44 = vadd.f32 %v385_v43, %v346_v41 }
 0x1b8   :  { %v973_v45 = vsel %vm381_vm10, 1.0, %v1276_v33  ;;  %v384_v46 = vsel %vm381_vm10, 0.0, %v379_v42 }
 0x1b9   :  { %v387_v47 = vmul.f32 0.9, %v384_v46  ;;  %v388_v48 = vmul.f32 0.1, %v386_v44  ;;  %1150 = vmatmul.mubr.msk.f32.vlgmr.msra.gmra.mrb[8].mxu0 %vm453_vm9, %v973_v45  ;;  %v394_v54 = vmul.f32 0.8, %v386_v44 }
 0x1ba   :  { %1239 = vmatpush3.bf16.msra.mxu0 %v1236_v36 }
 0x1bb   :  { %v389_v49 = vadd.f32 %v388_v48, %v387_v47 }
 0x1bd   :  { %v1126_v50 = vpop.f32.mrb[2].mxu1  ;;  %vm390_vm11 = vcmp.gt.f32.partialorder %v389_v49, 1.0 }
 0x1be   :  { %v350_v51 = vpop.f32.mrb[3].mxu1  ;;  %v974_v52 = vsel %vm390_vm11, 1.0, %v1276_v33  ;;  %v393_v55 = vsel %vm390_vm11, 0.0, %v389_v49  ;;  %v356_v57 = vadd.f32 %v1126_v50, %v965_v37 }
 0x1bf   :  { %v351_v53 = vadd.f32 %v965_v37, %v350_v51  ;;  %1152 = vmatprep.mubr.msk.f32.mxu0 %vm453_vm9, %v974_v52  ;;  %v396_v60 = vmul.f32 0.9, %v393_v55 }
 0x1c1   :  { %v395_v56 = vadd.f32 %v394_v54, %v351_v53 }
 0x1c3   :  { %v397_v58 = vmul.f32 0.1, %v395_v56  ;;  %v403_v59 = vmul.f32 0.8, %v395_v56 }
 0x1c5   :  { %v398_v61 = vadd.f32 %v397_v58, %v396_v60  ;;  %v404_v62 = vadd.f32 %v403_v59, %v356_v57 }
 0x1c7   :  { %vm399_vm12 = vcmp.gt.f32.partialorder %v398_v61, 1.0  ;;  %v406_v3 = vmul.f32 0.1, %v404_v62  ;;  %v412_v6 = vmul.f32 0.8, %v404_v62 }
 0x1c8   :  { %v975_v63 = vsel %vm399_vm12, 1.0, %v1276_v33  ;;  %v402_v0 = vsel %vm399_vm12, 0.0, %v398_v61 }
 0x1c9   :  { %v1129_v1 = vpop.f32.mrb[4].mxu1  ;;  %v405_v2 = vmul.f32 0.9, %v402_v0  ;;  %1153 = vmatmul.mubr.msk.f32.gmra.mrb[10].mxu0 %vm453_vm9, %v975_v63 }
 0x1ca   :  { %v360_v4 = vpop.f32.mrb[5].mxu1  ;;  %v366_v11 = vadd.f32 %v1129_v1, %v965_v37 }
 0x1cb   :  { %v361_v5 = vadd.f32 %v965_v37, %v360_v4  ;;  %v407_v7 = vadd.f32 %v406_v3, %v405_v2 }
 0x1cd   :  { %v413_v8 = vadd.f32 %v412_v6, %v361_v5  ;;  %vm408_vm13 = vcmp.gt.f32.partialorder %v407_v7, 1.0 }
 0x1ce   :  { %v976_v9 = vsel %vm408_vm13, 1.0, %v1276_v33  ;;  %v411_v10 = vsel %vm408_vm13, 0.0, %v407_v7 }
 0x1cf   :  { %v415_v12 = vmul.f32 0.1, %v413_v8  ;;  %v421_v13 = vmul.f32 0.8, %v413_v8  ;;  %v414_v14 = vmul.f32 0.9, %v411_v10  ;;  %1155 = vmatprep.mubr.msk.f32.mxu0 %vm453_vm9, %v976_v9 }
 0x1d1   :  { %v416_v15 = vadd.f32 %v415_v12, %v414_v14  ;;  %v422_v16 = vadd.f32 %v421_v13, %v366_v11 }
 0x1d3   :  { %vm417_vm14 = vcmp.gt.f32.partialorder %v416_v15, 1.0  ;;  %v424_v21 = vmul.f32 0.1, %v422_v16  ;;  %v430_v24 = vmul.f32 0.8, %v422_v16 }
 0x1d4   :  { %v977_v17 = vsel %vm417_vm14, 1.0, %v1276_v33  ;;  %v420_v18 = vsel %vm417_vm14, 0.0, %v416_v15 }
 0x1d5   :  { %v1132_v19 = vpop.f32.mrb[6].mxu1  ;;  %v423_v20 = vmul.f32 0.9, %v420_v18  ;;  %1156 = vmatmul.mubr.msk.f32.gmra.mrb[12].mxu0 %vm453_vm9, %v977_v17 }
 0x1d6   :  { %v370_v22 = vpop.f32.mrb[7].mxu1 }
 0x1d7   :  { %v371_v23 = vadd.f32 %v965_v37, %v370_v22  ;;  %v425_v25 = vadd.f32 %v424_v21, %v423_v20  ;;  %v644_v37 = vld [vmem:[%s1539_s7 + $0x10] sm:$0xff] }
 0x1d8   :  { %v1240_v39 = vpack.c.bf16 %v645_v38, %v644_v37  ;;  %v849_v37 = vld [vmem:[%s1541_s9] sm:$0xff]  ;;  %v850_v38 = vld [vmem:[%s1541_s9 + $0x8] sm:$0xff] }
 0x1d9   :  { %v431_v26 = vadd.f32 %v430_v24, %v371_v23  ;;  %vm426_vm15 = vcmp.gt.f32.partialorder %v425_v25, 1.0 }
 0x1da   :  { %v978_v27 = vsel %vm426_vm15, 1.0, %v1276_v33  ;;  %v429_v28 = vsel %vm426_vm15, 0.0, %v425_v25  ;;  %1241 = vmatprep.subr.bf16.mxu0 %v1240_v39 }
 0x1db   :  { %v433_v29 = vmul.f32 0.1, %v431_v26  ;;  %v432_v30 = vmul.f32 0.9, %v429_v28  ;;  %1158 = vmatprep.mubr.msk.f32.mxu0 %vm453_vm9, %v978_v27  ;;  %1243 = vmatpush3.bf16.msra.mxu0 %v1240_v39  ;;  %v1278_v39 = vmov 0.0|0.0  }
 0x1dc   :  { %1244 = vmatprep.subr.bf16.mxu1 %v1278_v39 }
 0x1dd   :  { %v434_v31 = vadd.f32 %v433_v29, %v432_v30 }
 0x1df   :  { %vm435_vm0 = vcmp.gt.f32.partialorder %v434_v31, 1.0 }
 0x1e0   :  { %v979_v32 = vsel %vm435_vm0, 1.0, %v1276_v33 }
 0x1e1   :  { %1159 = vmatmul.mubr.msk.f32.gmra.mrb[14].mxu0 %vm453_vm9, %v979_v32  ;;  %vm1279_vm9 = vmmov 0  }
 0x1e2   :  { %1169 = vmatprep.mubr.f32.mxu0 %v1276_v33  ;;  %1185 = vmatprep.mubr.msk.f32.mxu1 %vm1279_vm9, %v1276_v33 }
 0x28c   :  { %v1151_v41 = vpop.f32.mrb[8].mxu0 }
 0x28d   :  { %v544_v42 = vpop.f32.mrb[9].mxu0  ;;  %v550_v44 = vadd.f32 %v1151_v41, %v980_v40  ;;  %v995_v41 = vld [vmem:[%s1540_s8] ss:$0 sm:$0xff] }
 0x28e   :  { %v545_v43 = vadd.f32 %v980_v40, %v544_v42 }
 0x290   :  { %v583_v45 = vmul.f32 0.1, %v545_v43  ;;  %v589_v46 = vmul.f32 0.8, %v545_v43 }
 0x292   :  { %vm585_vm2 = vcmp.gt.f32.partialorder %v583_v45, 1.0  ;;  %v590_v47 = vadd.f32 %v589_v46, %v550_v44 }
 0x293   :  { %v988_v48 = vsel %vm585_vm2, 1.0, %v1276_v33  ;;  %v588_v49 = vsel %vm585_vm2, 0.0, %v583_v45 }
 0x294   :  { %v591_v50 = vmul.f32 0.9, %v588_v49  ;;  %v592_v51 = vmul.f32 0.1, %v590_v47  ;;  %1170 = vmatmul.mubr.msk.f32.vlgmr.msra.gmra.mrb[16].mxu0 %vm653_vm1, %v988_v48  ;;  %v598_v57 = vmul.f32 0.8, %v590_v47 }
 0x296   :  { %v593_v52 = vadd.f32 %v592_v51, %v591_v50 }
 0x298   :  { %vm594_vm3 = vcmp.gt.f32.partialorder %v593_v52, 1.0 }
 0x299   :  { %v989_v53 = vsel %vm594_vm3, 1.0, %v1276_v33  ;;  %v597_v58 = vsel %vm594_vm3, 0.0, %v593_v52 }
 0x29a   :  { %1172 = vmatprep.mubr.msk.f32.mxu0 %vm653_vm1, %v989_v53  ;;  %v600_v60 = vmul.f32 0.9, %v597_v58 }
 0x29c   :  { %v1154_v54 = vpop.f32.mrb[10].mxu0 }
 0x29d   :  { %v554_v55 = vpop.f32.mrb[11].mxu0  ;;  %v560_v61 = vadd.f32 %v1154_v54, %v980_v40 }
 0x29e   :  { %v555_v56 = vadd.f32 %v980_v40, %v554_v55 }
 0x2a0   :  { %v599_v59 = vadd.f32 %v598_v57, %v555_v56 }
 0x2a2   :  { %v601_v62 = vmul.f32 0.1, %v599_v59  ;;  %v607_v63 = vmul.f32 0.8, %v599_v59 }
 0x2a4   :  { %v602_v0 = vadd.f32 %v601_v62, %v600_v60  ;;  %v608_v1 = vadd.f32 %v607_v63, %v560_v61 }
 0x2a6   :  { %vm603_vm4 = vcmp.gt.f32.partialorder %v602_v0, 1.0  ;;  %v610_v6 = vmul.f32 0.1, %v608_v1  ;;  %v616_v9 = vmul.f32 0.8, %v608_v1 }
 0x2a7   :  { %v990_v2 = vsel %vm603_vm4, 1.0, %v1276_v33  ;;  %v606_v3 = vsel %vm603_vm4, 0.0, %v602_v0 }
 0x2a8   :  { %v1157_v4 = vpop.f32.mrb[12].mxu0  ;;  %v609_v5 = vmul.f32 0.9, %v606_v3  ;;  %1173 = vmatmul.mubr.msk.f32.gmra.mrb[18].mxu0 %vm653_vm1, %v990_v2 }
 0x2a9   :  { %v564_v7 = vpop.f32.mrb[13].mxu0  ;;  %v570_v14 = vadd.f32 %v1157_v4, %v980_v40 }
 0x2aa   :  { %v565_v8 = vadd.f32 %v980_v40, %v564_v7  ;;  %v611_v10 = vadd.f32 %v610_v6, %v609_v5 }
 0x2ac   :  { %v617_v11 = vadd.f32 %v616_v9, %v565_v8  ;;  %vm612_vm5 = vcmp.gt.f32.partialorder %v611_v10, 1.0 }
 0x2ad   :  { %v991_v12 = vsel %vm612_vm5, 1.0, %v1276_v33  ;;  %v615_v13 = vsel %vm612_vm5, 0.0, %v611_v10 }
 0x2ae   :  { %v619_v15 = vmul.f32 0.1, %v617_v11  ;;  %v625_v16 = vmul.f32 0.8, %v617_v11  ;;  %v618_v17 = vmul.f32 0.9, %v615_v13  ;;  %1175 = vmatprep.mubr.msk.f32.mxu0 %vm653_vm1, %v991_v12 }
 0x2b0   :  { %v620_v18 = vadd.f32 %v619_v15, %v618_v17  ;;  %v626_v19 = vadd.f32 %v625_v16, %v570_v14 }
 0x2b2   :  { %vm621_vm6 = vcmp.gt.f32.partialorder %v620_v18, 1.0  ;;  %v628_v24 = vmul.f32 0.1, %v626_v19  ;;  %v634_v27 = vmul.f32 0.8, %v626_v19 }
 0x2b3   :  { %v992_v20 = vsel %vm621_vm6, 1.0, %v1276_v33  ;;  %v624_v21 = vsel %vm621_vm6, 0.0, %v620_v18 }
 0x2b4   :  { %v1160_v22 = vpop.f32.mrb[14].mxu0  ;;  %v627_v23 = vmul.f32 0.9, %v624_v21  ;;  %1176 = vmatmul.mubr.msk.f32.gmra.mrb[20].mxu0 %vm653_vm1, %v992_v20 }
 0x2b5   :  { %v574_v25 = vpop.f32.mrb[15].mxu0 }
 0x2b6   :  { %v575_v26 = vadd.f32 %v980_v40, %v574_v25  ;;  %v629_v28 = vadd.f32 %v628_v24, %v627_v23  ;;  %v1245_v40 = vpack.c.bf16 %v850_v38, %v849_v37 }
 0x2b8   :  { %v635_v29 = vadd.f32 %v634_v27, %v575_v26  ;;  %vm630_vm7 = vcmp.gt.f32.partialorder %v629_v28, 1.0  ;;  %1246 = vmatpush3.bf16.msra.mxu1 %v1245_v40 }
 0x2b9   :  { %v993_v30 = vsel %vm630_vm7, 1.0, %v1276_v33  ;;  %v633_v31 = vsel %vm630_vm7, 0.0, %v629_v28 }
 0x2ba   :  { %v637_v32 = vmul.f32 0.1, %v635_v29  ;;  %v636_v34 = vmul.f32 0.9, %v633_v31  ;;  %1178 = vmatprep.mubr.msk.f32.mxu0 %vm653_vm1, %v993_v30 }
 0x2bc   :  { %v638_v35 = vadd.f32 %v637_v32, %v636_v34 }
 0x2be   :  { %vm639_vm8 = vcmp.gt.f32.partialorder %v638_v35, 1.0 }
 0x2bf   :  { %v994_v36 = vsel %vm639_vm8, 1.0, %v1276_v33 }
 0x2c0   :  { %1179 = vmatmul.mubr.msk.f32.gmra.mrb[22].mxu0 %vm653_vm1, %v994_v36  ;;  %vm859_vm1 = vcmask 130048  }
 0x367   :  { %v1171_v42 = vpop.f32.mrb[16].mxu0 }
 0x368   :  { %v743_v43 = vpop.f32.mrb[17].mxu0  ;;  %v749_v45 = vadd.f32 %v1171_v42, %v995_v41 }
 0x369   :  { %v744_v44 = vadd.f32 %v995_v41, %v743_v43 }
 0x36b   :  { %v783_v46 = vmul.f32 0.1, %v744_v44  ;;  %v789_v47 = vmul.f32 0.8, %v744_v44 }
 0x36d   :  { %vm785_vm10 = vcmp.gt.f32.partialorder %v783_v46, 1.0  ;;  %v790_v48 = vadd.f32 %v789_v47, %v749_v45  ;;  %v854_v45 = vlaneseq }
 0x36e   :  { %v788_v49 = vsel %vm785_vm10, 0.0, %v783_v46  ;;  %v1003_v53 = vsel %vm785_vm10, 1.0, %v1276_v33 }
 0x36f   :  { %v792_v50 = vmul.f32 0.9, %v788_v49  ;;  %v793_v51 = vmul.f32 0.1, %v790_v48  ;;  %v799_v59 = vmul.f32 0.8, %v790_v48 }
 0x370   :  { %v855_v46 = vshrl.u32 %v854_v45, 7 }
 0x371   :  { %v794_v52 = vadd.f32 %v793_v51, %v792_v50 }
 0x372   :  { %v856_v48 = vsub.s32 0, %v855_v46 }
 0x373   :  { %vm795_vm11 = vcmp.gt.f32.partialorder %v794_v52, 1.0 }
 0x374   :  { %v1004_v54 = vsel %vm795_vm11, 1.0, %v1276_v33  ;;  %v798_v60 = vsel %vm795_vm11, 0.0, %v794_v52 }
 0x375   :  { %v801_v55 = vadd.f32 %v1004_v54, %v1003_v53  ;;  %v802_v63 = vmul.f32 0.9, %v798_v60 }
 0x37b   :  { %v1174_v56 = vpop.f32.mrb[18].mxu0 }
 0x37c   :  { %v753_v57 = vpop.f32.mrb[19].mxu0  ;;  %v759_v62 = vadd.f32 %v1174_v56, %v995_v41 }
 0x37d   :  { %v754_v58 = vadd.f32 %v995_v41, %v753_v57 }
 0x37f   :  { %v800_v61 = vadd.f32 %v799_v59, %v754_v58 }
 0x381   :  { %v803_v0 = vmul.f32 0.1, %v800_v61  ;;  %v809_v1 = vmul.f32 0.8, %v800_v61 }
 0x383   :  { %v804_v2 = vadd.f32 %v803_v0, %v802_v63  ;;  %v810_v3 = vadd.f32 %v809_v1, %v759_v62 }
 0x385   :  { %vm805_vm12 = vcmp.gt.f32.partialorder %v804_v2, 1.0  ;;  %v813_v9 = vmul.f32 0.1, %v810_v3  ;;  %v819_v13 = vmul.f32 0.8, %v810_v3 }
 0x386   :  { %v1005_v4 = vsel %vm805_vm12, 1.0, %v1276_v33  ;;  %v808_v5 = vsel %vm805_vm12, 0.0, %v804_v2 }
 0x387   :  { %v811_v6 = vadd.f32 %v1005_v4, %v801_v55  ;;  %v812_v7 = vmul.f32 0.9, %v808_v5  ;;  %v1177_v8 = vpop.f32.mrb[20].mxu0 }
 0x388   :  { %v763_v10 = vpop.f32.mrb[21].mxu0  ;;  %v769_v15 = vadd.f32 %v1177_v8, %v995_v41 }
 0x389   :  { %v764_v11 = vadd.f32 %v995_v41, %v763_v10  ;;  %v814_v12 = vadd.f32 %v813_v9, %v812_v7 }
 0x38b   :  { %vm815_vm13 = vcmp.gt.f32.partialorder %v814_v12, 1.0  ;;  %v820_v14 = vadd.f32 %v819_v13, %v764_v11 }
 0x38c   :  { %v1006_v16 = vsel %vm815_vm13, 1.0, %v1276_v33  ;;  %v818_v17 = vsel %vm815_vm13, 0.0, %v814_v12 }
 0x38d   :  { %v821_v18 = vadd.f32 %v1006_v16, %v811_v6  ;;  %v822_v19 = vmul.f32 0.9, %v818_v17  ;;  %v823_v20 = vmul.f32 0.1, %v820_v14  ;;  %v829_v21 = vmul.f32 0.8, %v820_v14 }
 0x38f   :  { %v824_v22 = vadd.f32 %v823_v20, %v822_v19  ;;  %v830_v23 = vadd.f32 %v829_v21, %v769_v15 }
 0x391   :  { %vm825_vm14 = vcmp.gt.f32.partialorder %v824_v22, 1.0  ;;  %v833_v29 = vmul.f32 0.1, %v830_v23  ;;  %v839_v34 = vmul.f32 0.8, %v830_v23 }
 0x392   :  { %v1007_v24 = vsel %vm825_vm14, 1.0, %v1276_v33  ;;  %v828_v25 = vsel %vm825_vm14, 0.0, %v824_v22 }
 0x393   :  { %v831_v26 = vadd.f32 %v1007_v24, %v821_v18  ;;  %v832_v27 = vmul.f32 0.9, %v828_v25  ;;  %v1180_v28 = vpop.f32.mrb[22].mxu0 }
 0x394   :  { %v773_v30 = vpop.f32.mrb[23].mxu0 }
 0x395   :  { %v774_v31 = vadd.f32 %v995_v41, %v773_v30  ;;  %v834_v32 = vadd.f32 %v833_v29, %v832_v27  ;;  %v851_v41 = vld [vmem:[%s1542_s10] sm:$0x1] }
 0x396   :  { %v852_v47 = vmul.f32 8.0, %v851_v41 }
 0x397   :  { %vm835_vm15 = vcmp.gt.f32.partialorder %v834_v32, 1.0  ;;  %v840_v35 = vadd.f32 %v839_v34, %v774_v31 }
 0x398   :  { %v1008_v36 = vsel %vm835_vm15, 1.0, %v1276_v33  ;;  %v838_v37 = vsel %vm835_vm15, 0.0, %v834_v32  ;;  %v857_v49 = vrot.slane %v852_v47, %v856_v48 }
 0x399   :  { %v841_v38 = vadd.f32 %v1008_v36, %v831_v26  ;;  %v842_v39 = vmul.f32 0.9, %v838_v37  ;;  %v843_v40 = vmul.f32 0.1, %v840_v35 }
 0x39b   :  { %v844_v42 = vadd.f32 %v843_v40, %v842_v39 }
 0x39d   :  { %vm845_vm0 = vcmp.gt.f32.partialorder %v844_v42, 1.0 }
 0x39e   :  { %v1009_v43 = vsel %vm845_vm0, 1.0, %v1276_v33 }
 0x39f   :  { %v848_v44 = vadd.f32 %v1009_v43, %v841_v38 }
 0x3a1   :  { %1186 = vmatmul.mubr.msk.f32.vlgmr.msra.gmra.mrb[8].mxu1 %vm859_vm1, %v848_v44 }
 0x474   :  { %v929_v50 = vpop.f32.mrb[8].mxu1 }
 0x475   :  { %v930_v51 = vadd.f32 %v929_v50, %v857_v49  ;;  %v1187_v52 = vpop.f32.mrb[9].mxu1 }
 0x477   :  { %933 = vst [vmem:[#allocation2] sm:$0xff] %v930_v51 }
 0x478   :  { %1263 = shalt.err (!%p1260_p4)
}
 0x479   :  { %s1264_s10 = scalar_lea.hbm %s1543_s11, 128 }
 0x47a   :  { %p1265_p5 = scmp.ne.s32.totalorder %s1543_s11, %s1264_s10  ;;  %p1268_p6 = scmp.lt.u32.totalorder %s1264_s10, %s1543_s11 }
 0x47c   :  { %p1270_p7 = pnand %p1268_p6, %p1265_p5 }
 0x47e   :  { %1273 = shalt.err (!%p1270_p7)
}
 0x47f   :  { %943 = dma.vmem_to_hbm [thread:$0]  %s941_s2, 128, %s1543_s11, [#allocation3]  }
 0x480   :  { %1274 = dma.done.wait [#allocation3], 128  }
 0x481   :  { %1275 = vsyncadd [#allocation3], 4294967168 }
 0x482   :  { %947 = vsyncpa [#allocation3], 1 }

</bundles_post_ra>
